<compile_context>
chip_gen: v5e
topology: v5e:2x2
jax: 0.10.0
libtpu: 0.0.40
codegen_flags: <defaults>
</compile_context>

<pallas_src>
import functools

import jax
import jax.numpy as jnp
from jax.experimental import pallas as pl
from jax.experimental.pallas import tpu as pltpu

BN_EPS = 1e-5


def _resblock1d_kernel(x_ref, w_ref, g_ref, b_ref, o_ref, *,
                       nblocks, ksize, tlen, count):
    # x_ref : [Cin, Ntot]            Ntot = B*(T+2p); per-batch halos are zero
    # w_ref : [nblocks, Cout, K*Cin] w[i][o, k*Cin+c] = W_torch[o, c, k]
    #                                (bf16 on the fast path, f32 on exact path)
    # g_ref : [nblocks, Cout, 1]     BatchNorm gamma (f32)
    # b_ref : [nblocks, Cout, 1]     BatchNorm beta  (f32)
    # o_ref : [Cout, Ntot]
    cout, ntot = o_ref.shape
    p = ksize // 2
    s_len = tlen + 2 * p
    cdtype = x_ref.dtype                      # compute dtype (bf16 or f32)

    # In-kernel 0/1 mask of the valid (b, t) columns: col mod s_len in [p, p+T).
    # f32 divide is correctly rounded -> exact for Ntot well below 2^23.
    col = jax.lax.broadcasted_iota(jnp.int32, (1, ntot), 1).astype(jnp.float32)
    sf = jnp.float32(s_len)
    pos = col - jnp.floor(col / sf) * sf
    mask = jnp.where((pos >= jnp.float32(p)) & (pos < jnp.float32(p + tlen)),
                     jnp.float32(1.0), jnp.float32(0.0))      # [1, Ntot]

    h = x_ref[...]                             # [Cin, Ntot], compute dtype
    cin = h.shape[0]
    zfill = jnp.zeros((cin, p), cdtype)        # widest zero-fill ever needed
    inv_count = jnp.float32(1.0 / float(count))

    out = None
    for i in range(nblocks):                   # static unroll over blocks
        # Shift-with-zero-fill taps on the [Cin, Ntot] buffer (no global halo,
        # no re-embed): tap k at column j equals h[:, j + k - p] (zero if OOB).
        taps = []
        for k in range(ksize):
            d = k - p
            if d == 0:
                taps.append(h)
            elif d > 0:
                taps.append(jnp.concatenate([h[:, d:], zfill[:, :d]], axis=1))
            else:
                taps.append(jnp.concatenate([zfill[:, :(-d)], h[:, :ntot + d]],
                                            axis=1))
        im2col = jnp.concatenate(taps, axis=0)            # [K*Cin, Ntot]

        # Single deep MXU matmul with f32 accumulation (bf16 inputs on the
        # default path — bf16-native MXU on v5e/v6e/v7x).
        acc = jnp.dot(w_ref[i], im2col,
                      preferred_element_type=jnp.float32)  # [Cout, Ntot] f32

        # BatchNorm1d training-mode stats over the B*T valid columns only,
        # folded to per-channel scale/shift.  mask is 0/1, so
        # masked*masked == masked*acc; one stacked reduce yields s1 and s2.
        masked = acc * mask
        stats = jnp.concatenate([masked, masked * masked], axis=0)  # [2C, Ntot]
        sums = jnp.sum(stats, axis=1, keepdims=True)                # [2C, 1]
        s1 = sums[:cout]
        s2 = sums[cout:]
        mean = s1 * inv_count
        var = jnp.maximum(s2 * inv_count - mean * mean, 0.0)
        scale = g_ref[i] * jax.lax.rsqrt(var + BN_EPS)
        shift = b_ref[i] - mean * scale

        # Block ReLU + outer F.relu fold to one max; multiplying by the mask
        # re-zeroes the per-batch halo columns for the next block's padding.
        y = jnp.maximum(acc * scale + shift, 0.0) * mask   # [Cout, Ntot] f32
        out = y
        if i + 1 < nblocks:
            h = y.astype(cdtype)               # back to compute dtype (bf16)

    o_ref[...] = out.astype(o_ref.dtype)


def resblock1d_forward(x, conv_ws, gammas, betas, *, use_bf16_matmul=True):
    """x: [B, T, C] -> [B, T, C].  conv_ws[i]: [Cout, Cin, K] (PyTorch layout)."""
    b, t, c = x.shape
    nblocks = len(conv_ws)
    k = conv_ws[0].shape[-1]
    p = k // 2
    s = t + 2 * p
    ntot = b * s
    cdtype = jnp.bfloat16 if use_bf16_matmul else jnp.float32

    # One-time layout prep: channels-first, per-batch 'same' halos, flatten
    # (B, T+2p) onto the lane axis.  Cast to the compute dtype BEFORE the call
    # so every in-kernel tap copy moves 2-byte data on the fast path.
    xt = jnp.transpose(x, (2, 0, 1))                                  # [C, B, T]
    xf = jnp.pad(xt, ((0, 0), (0, 0), (p, p))).reshape(c, ntot)       # [C, Ntot]
    xf = xf.astype(cdtype)

    # Torch weight [Cout, Cin, K] -> [Cout, K*Cin] matching im2col row order.
    w_all = jnp.stack([jnp.transpose(w, (0, 2, 1)).reshape(c, k * c)
                       for w in conv_ws]).astype(cdtype)              # [nb, C, K*C]
    g_all = jnp.stack(gammas).reshape(nblocks, c, 1).astype(jnp.float32)
    b_all = jnp.stack(betas).reshape(nblocks, c, 1).astype(jnp.float32)

    def _nbytes(a):
        return a.size * a.dtype.itemsize

    flops = 2 * b * t * k * c * c * nblocks
    bytes_accessed = (_nbytes(xf) + _nbytes(w_all) + _nbytes(g_all)
                      + _nbytes(b_all) + c * ntot * x.dtype.itemsize)
    cost = pl.CostEstimate(flops=int(flops),
                           transcendentals=int(nblocks * c),
                           bytes_accessed=int(bytes_accessed))

    # Generation-aware scoped-VMEM limit: 3/4 of physical capacity, clamped to
    # [32 MiB, 100 MiB] (96 MiB on v5e/v6e, 48 MiB on v7x).
    try:
        cap = int(pltpu.get_tpu_info().vmem_capacity_bytes)
    except Exception:
        cap = 64 * 1024 * 1024
    vmem_limit = max(32 * 1024 * 1024,
                     min(int(cap * 3 // 4), 100 * 1024 * 1024))

    vmem = pl.BlockSpec(memory_space=pltpu.MemorySpace.VMEM)
    out_flat = pl.pallas_call(
        functools.partial(_resblock1d_kernel, nblocks=nblocks, ksize=k,
                          tlen=t, count=b * t),
        out_shape=jax.ShapeDtypeStruct((c, ntot), x.dtype),
        in_specs=[vmem, vmem, vmem, vmem],
        out_specs=vmem,
        compiler_params=pltpu.CompilerParams(vmem_limit_bytes=vmem_limit),
        cost_estimate=cost,
    )(xf, w_all, g_all, b_all)

    # [Cout, Ntot] -> [B, T, Cout]
    out = out_flat.reshape(c, b, s)[:, :, p:p + t]
    return jnp.transpose(out, (1, 2, 0))


def _ref_forward(x, conv_ws, gammas, betas):
    """Pure-JAX reference mirroring the PyTorch module (NCL conv, f32)."""
    h = jnp.transpose(x, (0, 2, 1))  # [B, C, T]
    for w, g, bta in zip(conv_ws, gammas, betas):
        k = w.shape[-1]
        h = jax.lax.conv_general_dilated(
            h, w, window_strides=(1,), padding=[(k // 2, k // 2)],
            dimension_numbers=("NCH", "OIH", "NCH"))
        mean = jnp.mean(h, axis=(0, 2), keepdims=True)
        var = jnp.mean((h - mean) ** 2, axis=(0, 2), keepdims=True)
        h = (h - mean) / jnp.sqrt(var + BN_EPS) \
            * g[None, :, None] + bta[None, :, None]
        h = jnp.maximum(h, 0.0)
    return jnp.transpose(h, (0, 2, 1))


if __name__ == "__main__":
    B, T, idim, odim = 2, 16, 8, 8
    ksize, nblocks = 15, 5  # module defaults

    key = jax.random.PRNGKey(0)
    keys = jax.random.split(key, 1 + 3 * nblocks)
    x = jax.random.normal(keys[0], (B, T, idim), jnp.float32)

    conv_ws, gammas, betas = [], [], []
    cin = idim
    for i in range(nblocks):
        kw, kg, kb = keys[1 + 3 * i], keys[2 + 3 * i], keys[3 + 3 * i]
        bound = 1.0 / float((cin * ksize) ** 0.5)  # Conv1d default init range
        conv_ws.append(
            jax.random.uniform(kw, (odim, cin, ksize), jnp.float32,
                               -bound, bound))
        gammas.append(jnp.ones((odim,), jnp.float32)
                      + 0.1 * jax.random.normal(kg, (odim,), jnp.float32))
        betas.append(0.1 * jax.random.normal(kb, (odim,), jnp.float32))
        cin = odim

    ref = _ref_forward(x, conv_ws, gammas, betas)

    # Exact f32 path: strict check of the kernel math.
    out_f32 = jax.block_until_ready(
        resblock1d_forward(x, conv_ws, gammas, betas, use_bf16_matmul=False))
    assert out_f32.shape == (B, T, odim), out_f32.shape
    err_f32 = float(jnp.max(jnp.abs(out_f32 - ref)))
    assert err_f32 < 1e-3, f"f32 path max abs error {err_f32}"

    # Default bf16 fast path (bf16 taps/weights, f32 MXU accumulation, BN
    # renorm each block): looser tolerance across the 5-deep stack.
    out_bf16 = jax.block_until_ready(
        resblock1d_forward(x, conv_ws, gammas, betas))
    assert out_bf16.shape == (B, T, odim), out_bf16.shape
    err_bf16 = float(jnp.max(jnp.abs(out_bf16 - ref)))
    assert err_bf16 < 1e-1, f"bf16 path max abs error {err_bf16}"

    print("KERNEL_OK")
</pallas_src>

<mosaic_0001>
module attributes {stable_mosaic.version = 11 : i64} {
  func.func @_resblock1d_kernel(%arg0: memref<8x60xf32, #tpu.memory_space<vmem>>, %arg1: memref<5x8x120xf32, #tpu.memory_space<vmem>>, %arg2: memref<5x8x1xf32, #tpu.memory_space<vmem>>, %arg3: memref<5x8x1xf32, #tpu.memory_space<vmem>>, %arg4: memref<8x60xf32, #tpu.memory_space<vmem>>) attributes {dimension_semantics = [], scalar_prefetch = 0 : i64, scratch_operands = 0 : i64, tpu.core_type = #tpu.core_type<tc>} {
    %0 = tpu.iota {dimensions = array<i32: 1>} : vector<1x60xi32>
    %1 = arith.sitofp %0 : vector<1x60xi32> to vector<1x60xf32>
    %cst = arith.constant 3.000000e+01 : f32
    %2 = vector.broadcast %cst : f32 to vector<1x60xf32>
    %3 = arith.divf %1, %2 : vector<1x60xf32>
    %4 = math.floor %3 : vector<1x60xf32>
    %cst_0 = arith.constant 3.000000e+01 : f32
    %5 = vector.broadcast %cst_0 : f32 to vector<1x60xf32>
    %6 = arith.mulf %4, %5 : vector<1x60xf32>
    %7 = arith.subf %1, %6 : vector<1x60xf32>
    %cst_1 = arith.constant 7.000000e+00 : f32
    %8 = vector.broadcast %cst_1 : f32 to vector<1x60xf32>
    %9 = arith.cmpf oge, %7, %8 : vector<1x60xf32>
    %cst_2 = arith.constant 2.300000e+01 : f32
    %10 = vector.broadcast %cst_2 : f32 to vector<1x60xf32>
    %11 = arith.cmpf olt, %7, %10 : vector<1x60xf32>
    %12 = arith.andi %9, %11 : vector<1x60xi1>
    %cst_3 = arith.constant 1.000000e+00 : f32
    %cst_4 = arith.constant 0.000000e+00 : f32
    %13 = vector.broadcast %cst_3 : f32 to vector<1x60xf32>
    %14 = vector.broadcast %cst_4 : f32 to vector<1x60xf32>
    %15 = arith.select %12, %13, %14 : vector<1x60xi1>, vector<1x60xf32>
    %c0 = arith.constant 0 : index
    %c0_5 = arith.constant 0 : index
    %16 = vector.load %arg0[%c0, %c0_5] : memref<8x60xf32, #tpu.memory_space<vmem>>, vector<8x60xf32>
    %cst_6 = arith.constant 0.000000e+00 : f32
    %17 = vector.broadcast %cst_6 : f32 to vector<8x7xf32>
    %18 = vector.extract_strided_slice %16 {offsets = [0, 0], sizes = [8, 53], strides = [1, 1]} : vector<8x60xf32> to vector<8x53xf32>
    %19 = tpu.concatenate %17, %18 in 1 : vector<8x7xf32>, vector<8x53xf32> -> vector<8x60xf32>
    %20 = vector.extract_strided_slice %17 {offsets = [0, 0], sizes = [8, 6], strides = [1, 1]} : vector<8x7xf32> to vector<8x6xf32>
    %21 = vector.extract_strided_slice %16 {offsets = [0, 0], sizes = [8, 54], strides = [1, 1]} : vector<8x60xf32> to vector<8x54xf32>
    %22 = tpu.concatenate %20, %21 in 1 : vector<8x6xf32>, vector<8x54xf32> -> vector<8x60xf32>
    %23 = vector.extract_strided_slice %17 {offsets = [0, 0], sizes = [8, 5], strides = [1, 1]} : vector<8x7xf32> to vector<8x5xf32>
    %24 = vector.extract_strided_slice %16 {offsets = [0, 0], sizes = [8, 55], strides = [1, 1]} : vector<8x60xf32> to vector<8x55xf32>
    %25 = tpu.concatenate %23, %24 in 1 : vector<8x5xf32>, vector<8x55xf32> -> vector<8x60xf32>
    %26 = vector.extract_strided_slice %17 {offsets = [0, 0], sizes = [8, 4], strides = [1, 1]} : vector<8x7xf32> to vector<8x4xf32>
    %27 = vector.extract_strided_slice %16 {offsets = [0, 0], sizes = [8, 56], strides = [1, 1]} : vector<8x60xf32> to vector<8x56xf32>
    %28 = tpu.concatenate %26, %27 in 1 : vector<8x4xf32>, vector<8x56xf32> -> vector<8x60xf32>
    %29 = vector.extract_strided_slice %17 {offsets = [0, 0], sizes = [8, 3], strides = [1, 1]} : vector<8x7xf32> to vector<8x3xf32>
    %30 = vector.extract_strided_slice %16 {offsets = [0, 0], sizes = [8, 57], strides = [1, 1]} : vector<8x60xf32> to vector<8x57xf32>
    %31 = tpu.concatenate %29, %30 in 1 : vector<8x3xf32>, vector<8x57xf32> -> vector<8x60xf32>
    %32 = vector.extract_strided_slice %17 {offsets = [0, 0], sizes = [8, 2], strides = [1, 1]} : vector<8x7xf32> to vector<8x2xf32>
    %33 = vector.extract_strided_slice %16 {offsets = [0, 0], sizes = [8, 58], strides = [1, 1]} : vector<8x60xf32> to vector<8x58xf32>
    %34 = tpu.concatenate %32, %33 in 1 : vector<8x2xf32>, vector<8x58xf32> -> vector<8x60xf32>
    %35 = vector.extract_strided_slice %17 {offsets = [0, 0], sizes = [8, 1], strides = [1, 1]} : vector<8x7xf32> to vector<8x1xf32>
    %36 = vector.extract_strided_slice %16 {offsets = [0, 0], sizes = [8, 59], strides = [1, 1]} : vector<8x60xf32> to vector<8x59xf32>
    %37 = tpu.concatenate %35, %36 in 1 : vector<8x1xf32>, vector<8x59xf32> -> vector<8x60xf32>
    %38 = vector.extract_strided_slice %16 {offsets = [0, 1], sizes = [8, 59], strides = [1, 1]} : vector<8x60xf32> to vector<8x59xf32>
    %39 = vector.extract_strided_slice %17 {offsets = [0, 0], sizes = [8, 1], strides = [1, 1]} : vector<8x7xf32> to vector<8x1xf32>
    %40 = tpu.concatenate %38, %39 in 1 : vector<8x59xf32>, vector<8x1xf32> -> vector<8x60xf32>
    %41 = vector.extract_strided_slice %16 {offsets = [0, 2], sizes = [8, 58], strides = [1, 1]} : vector<8x60xf32> to vector<8x58xf32>
    %42 = vector.extract_strided_slice %17 {offsets = [0, 0], sizes = [8, 2], strides = [1, 1]} : vector<8x7xf32> to vector<8x2xf32>
    %43 = tpu.concatenate %41, %42 in 1 : vector<8x58xf32>, vector<8x2xf32> -> vector<8x60xf32>
    %44 = vector.extract_strided_slice %16 {offsets = [0, 3], sizes = [8, 57], strides = [1, 1]} : vector<8x60xf32> to vector<8x57xf32>
    %45 = vector.extract_strided_slice %17 {offsets = [0, 0], sizes = [8, 3], strides = [1, 1]} : vector<8x7xf32> to vector<8x3xf32>
    %46 = tpu.concatenate %44, %45 in 1 : vector<8x57xf32>, vector<8x3xf32> -> vector<8x60xf32>
    %47 = vector.extract_strided_slice %16 {offsets = [0, 4], sizes = [8, 56], strides = [1, 1]} : vector<8x60xf32> to vector<8x56xf32>
    %48 = vector.extract_strided_slice %17 {offsets = [0, 0], sizes = [8, 4], strides = [1, 1]} : vector<8x7xf32> to vector<8x4xf32>
    %49 = tpu.concatenate %47, %48 in 1 : vector<8x56xf32>, vector<8x4xf32> -> vector<8x60xf32>
    %50 = vector.extract_strided_slice %16 {offsets = [0, 5], sizes = [8, 55], strides = [1, 1]} : vector<8x60xf32> to vector<8x55xf32>
    %51 = vector.extract_strided_slice %17 {offsets = [0, 0], sizes = [8, 5], strides = [1, 1]} : vector<8x7xf32> to vector<8x5xf32>
    %52 = tpu.concatenate %50, %51 in 1 : vector<8x55xf32>, vector<8x5xf32> -> vector<8x60xf32>
    %53 = vector.extract_strided_slice %16 {offsets = [0, 6], sizes = [8, 54], strides = [1, 1]} : vector<8x60xf32> to vector<8x54xf32>
    %54 = vector.extract_strided_slice %17 {offsets = [0, 0], sizes = [8, 6], strides = [1, 1]} : vector<8x7xf32> to vector<8x6xf32>
    %55 = tpu.concatenate %53, %54 in 1 : vector<8x54xf32>, vector<8x6xf32> -> vector<8x60xf32>
    %56 = vector.extract_strided_slice %16 {offsets = [0, 7], sizes = [8, 53], strides = [1, 1]} : vector<8x60xf32> to vector<8x53xf32>
    %57 = tpu.concatenate %56, %17 in 1 : vector<8x53xf32>, vector<8x7xf32> -> vector<8x60xf32>
    %58 = tpu.concatenate %19, %22, %25, %28, %31, %34, %37, %16, %40, %43, %46, %49, %52, %55, %57 in 0 : vector<8x60xf32>, vector<8x60xf32>, vector<8x60xf32>, vector<8x60xf32>, vector<8x60xf32>, vector<8x60xf32>, vector<8x60xf32>, vector<8x60xf32>, vector<8x60xf32>, vector<8x60xf32>, vector<8x60xf32>, vector<8x60xf32>, vector<8x60xf32>, vector<8x60xf32>, vector<8x60xf32> -> vector<120x60xf32>
    %c0_7 = arith.constant 0 : index
    %c0_8 = arith.constant 0 : index
    %c0_9 = arith.constant 0 : index
    %59 = vector.load %arg1[%c0_7, %c0_8, %c0_9] : memref<5x8x120xf32, #tpu.memory_space<vmem>>, vector<1x8x120xf32>
    %60 = vector.shape_cast %59 : vector<1x8x120xf32> to vector<8x120xf32>
    %cst_10 = arith.constant dense<0.000000e+00> : vector<8x60xf32>
    %61 = tpu.matmul %60, %58, %cst_10 {dimension_numbers = #tpu.dot_dimension_numbers<[1], [0], [0], [1], [0, 0, 1, 1], [], []>} : vector<8x120xf32>, vector<120x60xf32>, vector<8x60xf32> -> vector<8x60xf32>
    %62 = vector.broadcast %15 : vector<1x60xf32> to vector<8x60xf32>
    %63 = arith.mulf %61, %62 : vector<8x60xf32>
    %64 = arith.mulf %63, %63 : vector<8x60xf32>
    %65 = tpu.concatenate %63, %64 in 0 : vector<8x60xf32>, vector<8x60xf32> -> vector<16x60xf32>
    %cst_11 = arith.constant dense<0.000000e+00> : vector<16xf32>
    %66 = vector.multi_reduction <add>, %65, %cst_11 [1] : vector<16x60xf32> to vector<16xf32>
    %67 = vector.shape_cast %66 : vector<16xf32> to vector<16x1xf32>
    %68 = vector.extract_strided_slice %67 {offsets = [0, 0], sizes = [8, 1], strides = [1, 1]} : vector<16x1xf32> to vector<8x1xf32>
    %69 = vector.extract_strided_slice %67 {offsets = [8, 0], sizes = [8, 1], strides = [1, 1]} : vector<16x1xf32> to vector<8x1xf32>
    %cst_12 = arith.constant 3.125000e-02 : f32
    %70 = vector.broadcast %cst_12 : f32 to vector<8x1xf32>
    %71 = arith.mulf %68, %70 : vector<8x1xf32>
    %cst_13 = arith.constant 3.125000e-02 : f32
    %72 = vector.broadcast %cst_13 : f32 to vector<8x1xf32>
    %73 = arith.mulf %69, %72 : vector<8x1xf32>
    %74 = arith.mulf %71, %71 : vector<8x1xf32>
    %75 = arith.subf %73, %74 : vector<8x1xf32>
    %cst_14 = arith.constant 0.000000e+00 : f32
    %76 = vector.broadcast %cst_14 : f32 to vector<8x1xf32>
    %77 = arith.maximumf %75, %76 : vector<8x1xf32>
    %c0_15 = arith.constant 0 : index
    %c0_16 = arith.constant 0 : index
    %c0_17 = arith.constant 0 : index
    %78 = vector.load %arg2[%c0_15, %c0_16, %c0_17] : memref<5x8x1xf32, #tpu.memory_space<vmem>>, vector<1x8x1xf32>
    %79 = vector.shape_cast %78 : vector<1x8x1xf32> to vector<8x1xf32>
    %cst_18 = arith.constant 9.99999974E-6 : f32
    %80 = vector.broadcast %cst_18 : f32 to vector<8x1xf32>
    %81 = arith.addf %77, %80 : vector<8x1xf32>
    %82 = math.rsqrt %81 : vector<8x1xf32>
    %83 = arith.mulf %79, %82 : vector<8x1xf32>
    %c0_19 = arith.constant 0 : index
    %c0_20 = arith.constant 0 : index
    %c0_21 = arith.constant 0 : index
    %84 = vector.load %arg3[%c0_19, %c0_20, %c0_21] : memref<5x8x1xf32, #tpu.memory_space<vmem>>, vector<1x8x1xf32>
    %85 = vector.shape_cast %84 : vector<1x8x1xf32> to vector<8x1xf32>
    %86 = arith.mulf %71, %83 : vector<8x1xf32>
    %87 = arith.subf %85, %86 : vector<8x1xf32>
    %88 = vector.broadcast %83 : vector<8x1xf32> to vector<8x60xf32>
    %89 = arith.mulf %61, %88 : vector<8x60xf32>
    %90 = vector.broadcast %87 : vector<8x1xf32> to vector<8x60xf32>
    %91 = arith.addf %89, %90 : vector<8x60xf32>
    %cst_22 = arith.constant 0.000000e+00 : f32
    %92 = vector.broadcast %cst_22 : f32 to vector<8x60xf32>
    %93 = arith.maximumf %91, %92 : vector<8x60xf32>
    %94 = vector.broadcast %15 : vector<1x60xf32> to vector<8x60xf32>
    %95 = arith.mulf %93, %94 : vector<8x60xf32>
    %96 = vector.extract_strided_slice %95 {offsets = [0, 0], sizes = [8, 53], strides = [1, 1]} : vector<8x60xf32> to vector<8x53xf32>
    %97 = tpu.concatenate %17, %96 in 1 : vector<8x7xf32>, vector<8x53xf32> -> vector<8x60xf32>
    %98 = vector.extract_strided_slice %17 {offsets = [0, 0], sizes = [8, 6], strides = [1, 1]} : vector<8x7xf32> to vector<8x6xf32>
    %99 = vector.extract_strided_slice %95 {offsets = [0, 0], sizes = [8, 54], strides = [1, 1]} : vector<8x60xf32> to vector<8x54xf32>
    %100 = tpu.concatenate %98, %99 in 1 : vector<8x6xf32>, vector<8x54xf32> -> vector<8x60xf32>
    %101 = vector.extract_strided_slice %17 {offsets = [0, 0], sizes = [8, 5], strides = [1, 1]} : vector<8x7xf32> to vector<8x5xf32>
    %102 = vector.extract_strided_slice %95 {offsets = [0, 0], sizes = [8, 55], strides = [1, 1]} : vector<8x60xf32> to vector<8x55xf32>
    %103 = tpu.concatenate %101, %102 in 1 : vector<8x5xf32>, vector<8x55xf32> -> vector<8x60xf32>
    %104 = vector.extract_strided_slice %17 {offsets = [0, 0], sizes = [8, 4], strides = [1, 1]} : vector<8x7xf32> to vector<8x4xf32>
    %105 = vector.extract_strided_slice %95 {offsets = [0, 0], sizes = [8, 56], strides = [1, 1]} : vector<8x60xf32> to vector<8x56xf32>
    %106 = tpu.concatenate %104, %105 in 1 : vector<8x4xf32>, vector<8x56xf32> -> vector<8x60xf32>
    %107 = vector.extract_strided_slice %17 {offsets = [0, 0], sizes = [8, 3], strides = [1, 1]} : vector<8x7xf32> to vector<8x3xf32>
    %108 = vector.extract_strided_slice %95 {offsets = [0, 0], sizes = [8, 57], strides = [1, 1]} : vector<8x60xf32> to vector<8x57xf32>
    %109 = tpu.concatenate %107, %108 in 1 : vector<8x3xf32>, vector<8x57xf32> -> vector<8x60xf32>
    %110 = vector.extract_strided_slice %17 {offsets = [0, 0], sizes = [8, 2], strides = [1, 1]} : vector<8x7xf32> to vector<8x2xf32>
    %111 = vector.extract_strided_slice %95 {offsets = [0, 0], sizes = [8, 58], strides = [1, 1]} : vector<8x60xf32> to vector<8x58xf32>
    %112 = tpu.concatenate %110, %111 in 1 : vector<8x2xf32>, vector<8x58xf32> -> vector<8x60xf32>
    %113 = vector.extract_strided_slice %17 {offsets = [0, 0], sizes = [8, 1], strides = [1, 1]} : vector<8x7xf32> to vector<8x1xf32>
    %114 = vector.extract_strided_slice %95 {offsets = [0, 0], sizes = [8, 59], strides = [1, 1]} : vector<8x60xf32> to vector<8x59xf32>
    %115 = tpu.concatenate %113, %114 in 1 : vector<8x1xf32>, vector<8x59xf32> -> vector<8x60xf32>
    %116 = vector.extract_strided_slice %95 {offsets = [0, 1], sizes = [8, 59], strides = [1, 1]} : vector<8x60xf32> to vector<8x59xf32>
    %117 = vector.extract_strided_slice %17 {offsets = [0, 0], sizes = [8, 1], strides = [1, 1]} : vector<8x7xf32> to vector<8x1xf32>
    %118 = tpu.concatenate %116, %117 in 1 : vector<8x59xf32>, vector<8x1xf32> -> vector<8x60xf32>
    %119 = vector.extract_strided_slice %95 {offsets = [0, 2], sizes = [8, 58], strides = [1, 1]} : vector<8x60xf32> to vector<8x58xf32>
    %120 = vector.extract_strided_slice %17 {offsets = [0, 0], sizes = [8, 2], strides = [1, 1]} : vector<8x7xf32> to vector<8x2xf32>
    %121 = tpu.concatenate %119, %120 in 1 : vector<8x58xf32>, vector<8x2xf32> -> vector<8x60xf32>
    %122 = vector.extract_strided_slice %95 {offsets = [0, 3], sizes = [8, 57], strides = [1, 1]} : vector<8x60xf32> to vector<8x57xf32>
    %123 = vector.extract_strided_slice %17 {offsets = [0, 0], sizes = [8, 3], strides = [1, 1]} : vector<8x7xf32> to vector<8x3xf32>
    %124 = tpu.concatenate %122, %123 in 1 : vector<8x57xf32>, vector<8x3xf32> -> vector<8x60xf32>
    %125 = vector.extract_strided_slice %95 {offsets = [0, 4], sizes = [8, 56], strides = [1, 1]} : vector<8x60xf32> to vector<8x56xf32>
    %126 = vector.extract_strided_slice %17 {offsets = [0, 0], sizes = [8, 4], strides = [1, 1]} : vector<8x7xf32> to vector<8x4xf32>
    %127 = tpu.concatenate %125, %126 in 1 : vector<8x56xf32>, vector<8x4xf32> -> vector<8x60xf32>
    %128 = vector.extract_strided_slice %95 {offsets = [0, 5], sizes = [8, 55], strides = [1, 1]} : vector<8x60xf32> to vector<8x55xf32>
    %129 = vector.extract_strided_slice %17 {offsets = [0, 0], sizes = [8, 5], strides = [1, 1]} : vector<8x7xf32> to vector<8x5xf32>
    %130 = tpu.concatenate %128, %129 in 1 : vector<8x55xf32>, vector<8x5xf32> -> vector<8x60xf32>
    %131 = vector.extract_strided_slice %95 {offsets = [0, 6], sizes = [8, 54], strides = [1, 1]} : vector<8x60xf32> to vector<8x54xf32>
    %132 = vector.extract_strided_slice %17 {offsets = [0, 0], sizes = [8, 6], strides = [1, 1]} : vector<8x7xf32> to vector<8x6xf32>
    %133 = tpu.concatenate %131, %132 in 1 : vector<8x54xf32>, vector<8x6xf32> -> vector<8x60xf32>
    %134 = vector.extract_strided_slice %95 {offsets = [0, 7], sizes = [8, 53], strides = [1, 1]} : vector<8x60xf32> to vector<8x53xf32>
    %135 = tpu.concatenate %134, %17 in 1 : vector<8x53xf32>, vector<8x7xf32> -> vector<8x60xf32>
    %136 = tpu.concatenate %97, %100, %103, %106, %109, %112, %115, %95, %118, %121, %124, %127, %130, %133, %135 in 0 : vector<8x60xf32>, vector<8x60xf32>, vector<8x60xf32>, vector<8x60xf32>, vector<8x60xf32>, vector<8x60xf32>, vector<8x60xf32>, vector<8x60xf32>, vector<8x60xf32>, vector<8x60xf32>, vector<8x60xf32>, vector<8x60xf32>, vector<8x60xf32>, vector<8x60xf32>, vector<8x60xf32> -> vector<120x60xf32>
    %c1 = arith.constant 1 : index
    %c0_23 = arith.constant 0 : index
    %c0_24 = arith.constant 0 : index
    %137 = vector.load %arg1[%c1, %c0_23, %c0_24] : memref<5x8x120xf32, #tpu.memory_space<vmem>>, vector<1x8x120xf32>
    %138 = vector.shape_cast %137 : vector<1x8x120xf32> to vector<8x120xf32>
    %cst_25 = arith.constant dense<0.000000e+00> : vector<8x60xf32>
    %139 = tpu.matmul %138, %136, %cst_25 {dimension_numbers = #tpu.dot_dimension_numbers<[1], [0], [0], [1], [0, 0, 1, 1], [], []>} : vector<8x120xf32>, vector<120x60xf32>, vector<8x60xf32> -> vector<8x60xf32>
    %140 = vector.broadcast %15 : vector<1x60xf32> to vector<8x60xf32>
    %141 = arith.mulf %139, %140 : vector<8x60xf32>
    %142 = arith.mulf %141, %141 : vector<8x60xf32>
    %143 = tpu.concatenate %141, %142 in 0 : vector<8x60xf32>, vector<8x60xf32> -> vector<16x60xf32>
    %cst_26 = arith.constant dense<0.000000e+00> : vector<16xf32>
    %144 = vector.multi_reduction <add>, %143, %cst_26 [1] : vector<16x60xf32> to vector<16xf32>
    %145 = vector.shape_cast %144 : vector<16xf32> to vector<16x1xf32>
    %146 = vector.extract_strided_slice %145 {offsets = [0, 0], sizes = [8, 1], strides = [1, 1]} : vector<16x1xf32> to vector<8x1xf32>
    %147 = vector.extract_strided_slice %145 {offsets = [8, 0], sizes = [8, 1], strides = [1, 1]} : vector<16x1xf32> to vector<8x1xf32>
    %cst_27 = arith.constant 3.125000e-02 : f32
    %148 = vector.broadcast %cst_27 : f32 to vector<8x1xf32>
    %149 = arith.mulf %146, %148 : vector<8x1xf32>
    %cst_28 = arith.constant 3.125000e-02 : f32
    %150 = vector.broadcast %cst_28 : f32 to vector<8x1xf32>
    %151 = arith.mulf %147, %150 : vector<8x1xf32>
    %152 = arith.mulf %149, %149 : vector<8x1xf32>
    %153 = arith.subf %151, %152 : vector<8x1xf32>
    %cst_29 = arith.constant 0.000000e+00 : f32
    %154 = vector.broadcast %cst_29 : f32 to vector<8x1xf32>
    %155 = arith.maximumf %153, %154 : vector<8x1xf32>
    %c1_30 = arith.constant 1 : index
    %c0_31 = arith.constant 0 : index
    %c0_32 = arith.constant 0 : index
    %156 = vector.load %arg2[%c1_30, %c0_31, %c0_32] : memref<5x8x1xf32, #tpu.memory_space<vmem>>, vector<1x8x1xf32>
    %157 = vector.shape_cast %156 : vector<1x8x1xf32> to vector<8x1xf32>
    %cst_33 = arith.constant 9.99999974E-6 : f32
    %158 = vector.broadcast %cst_33 : f32 to vector<8x1xf32>
    %159 = arith.addf %155, %158 : vector<8x1xf32>
    %160 = math.rsqrt %159 : vector<8x1xf32>
    %161 = arith.mulf %157, %160 : vector<8x1xf32>
    %c1_34 = arith.constant 1 : index
    %c0_35 = arith.constant 0 : index
    %c0_36 = arith.constant 0 : index
    %162 = vector.load %arg3[%c1_34, %c0_35, %c0_36] : memref<5x8x1xf32, #tpu.memory_space<vmem>>, vector<1x8x1xf32>
    %163 = vector.shape_cast %162 : vector<1x8x1xf32> to vector<8x1xf32>
    %164 = arith.mulf %149, %161 : vector<8x1xf32>
    %165 = arith.subf %163, %164 : vector<8x1xf32>
    %166 = vector.broadcast %161 : vector<8x1xf32> to vector<8x60xf32>
    %167 = arith.mulf %139, %166 : vector<8x60xf32>
    %168 = vector.broadcast %165 : vector<8x1xf32> to vector<8x60xf32>
    %169 = arith.addf %167, %168 : vector<8x60xf32>
    %cst_37 = arith.constant 0.000000e+00 : f32
    %170 = vector.broadcast %cst_37 : f32 to vector<8x60xf32>
    %171 = arith.maximumf %169, %170 : vector<8x60xf32>
    %172 = vector.broadcast %15 : vector<1x60xf32> to vector<8x60xf32>
    %173 = arith.mulf %171, %172 : vector<8x60xf32>
    %174 = vector.extract_strided_slice %173 {offsets = [0, 0], sizes = [8, 53], strides = [1, 1]} : vector<8x60xf32> to vector<8x53xf32>
    %175 = tpu.concatenate %17, %174 in 1 : vector<8x7xf32>, vector<8x53xf32> -> vector<8x60xf32>
    %176 = vector.extract_strided_slice %17 {offsets = [0, 0], sizes = [8, 6], strides = [1, 1]} : vector<8x7xf32> to vector<8x6xf32>
    %177 = vector.extract_strided_slice %173 {offsets = [0, 0], sizes = [8, 54], strides = [1, 1]} : vector<8x60xf32> to vector<8x54xf32>
    %178 = tpu.concatenate %176, %177 in 1 : vector<8x6xf32>, vector<8x54xf32> -> vector<8x60xf32>
    %179 = vector.extract_strided_slice %17 {offsets = [0, 0], sizes = [8, 5], strides = [1, 1]} : vector<8x7xf32> to vector<8x5xf32>
    %180 = vector.extract_strided_slice %173 {offsets = [0, 0], sizes = [8, 55], strides = [1, 1]} : vector<8x60xf32> to vector<8x55xf32>
    %181 = tpu.concatenate %179, %180 in 1 : vector<8x5xf32>, vector<8x55xf32> -> vector<8x60xf32>
    %182 = vector.extract_strided_slice %17 {offsets = [0, 0], sizes = [8, 4], strides = [1, 1]} : vector<8x7xf32> to vector<8x4xf32>
    %183 = vector.extract_strided_slice %173 {offsets = [0, 0], sizes = [8, 56], strides = [1, 1]} : vector<8x60xf32> to vector<8x56xf32>
    %184 = tpu.concatenate %182, %183 in 1 : vector<8x4xf32>, vector<8x56xf32> -> vector<8x60xf32>
    %185 = vector.extract_strided_slice %17 {offsets = [0, 0], sizes = [8, 3], strides = [1, 1]} : vector<8x7xf32> to vector<8x3xf32>
    %186 = vector.extract_strided_slice %173 {offsets = [0, 0], sizes = [8, 57], strides = [1, 1]} : vector<8x60xf32> to vector<8x57xf32>
    %187 = tpu.concatenate %185, %186 in 1 : vector<8x3xf32>, vector<8x57xf32> -> vector<8x60xf32>
    %188 = vector.extract_strided_slice %17 {offsets = [0, 0], sizes = [8, 2], strides = [1, 1]} : vector<8x7xf32> to vector<8x2xf32>
    %189 = vector.extract_strided_slice %173 {offsets = [0, 0], sizes = [8, 58], strides = [1, 1]} : vector<8x60xf32> to vector<8x58xf32>
    %190 = tpu.concatenate %188, %189 in 1 : vector<8x2xf32>, vector<8x58xf32> -> vector<8x60xf32>
    %191 = vector.extract_strided_slice %17 {offsets = [0, 0], sizes = [8, 1], strides = [1, 1]} : vector<8x7xf32> to vector<8x1xf32>
    %192 = vector.extract_strided_slice %173 {offsets = [0, 0], sizes = [8, 59], strides = [1, 1]} : vector<8x60xf32> to vector<8x59xf32>
    %193 = tpu.concatenate %191, %192 in 1 : vector<8x1xf32>, vector<8x59xf32> -> vector<8x60xf32>
    %194 = vector.extract_strided_slice %173 {offsets = [0, 1], sizes = [8, 59], strides = [1, 1]} : vector<8x60xf32> to vector<8x59xf32>
    %195 = vector.extract_strided_slice %17 {offsets = [0, 0], sizes = [8, 1], strides = [1, 1]} : vector<8x7xf32> to vector<8x1xf32>
    %196 = tpu.concatenate %194, %195 in 1 : vector<8x59xf32>, vector<8x1xf32> -> vector<8x60xf32>
    %197 = vector.extract_strided_slice %173 {offsets = [0, 2], sizes = [8, 58], strides = [1, 1]} : vector<8x60xf32> to vector<8x58xf32>
    %198 = vector.extract_strided_slice %17 {offsets = [0, 0], sizes = [8, 2], strides = [1, 1]} : vector<8x7xf32> to vector<8x2xf32>
    %199 = tpu.concatenate %197, %198 in 1 : vector<8x58xf32>, vector<8x2xf32> -> vector<8x60xf32>
    %200 = vector.extract_strided_slice %173 {offsets = [0, 3], sizes = [8, 57], strides = [1, 1]} : vector<8x60xf32> to vector<8x57xf32>
    %201 = vector.extract_strided_slice %17 {offsets = [0, 0], sizes = [8, 3], strides = [1, 1]} : vector<8x7xf32> to vector<8x3xf32>
    %202 = tpu.concatenate %200, %201 in 1 : vector<8x57xf32>, vector<8x3xf32> -> vector<8x60xf32>
    %203 = vector.extract_strided_slice %173 {offsets = [0, 4], sizes = [8, 56], strides = [1, 1]} : vector<8x60xf32> to vector<8x56xf32>
    %204 = vector.extract_strided_slice %17 {offsets = [0, 0], sizes = [8, 4], strides = [1, 1]} : vector<8x7xf32> to vector<8x4xf32>
    %205 = tpu.concatenate %203, %204 in 1 : vector<8x56xf32>, vector<8x4xf32> -> vector<8x60xf32>
    %206 = vector.extract_strided_slice %173 {offsets = [0, 5], sizes = [8, 55], strides = [1, 1]} : vector<8x60xf32> to vector<8x55xf32>
    %207 = vector.extract_strided_slice %17 {offsets = [0, 0], sizes = [8, 5], strides = [1, 1]} : vector<8x7xf32> to vector<8x5xf32>
    %208 = tpu.concatenate %206, %207 in 1 : vector<8x55xf32>, vector<8x5xf32> -> vector<8x60xf32>
    %209 = vector.extract_strided_slice %173 {offsets = [0, 6], sizes = [8, 54], strides = [1, 1]} : vector<8x60xf32> to vector<8x54xf32>
    %210 = vector.extract_strided_slice %17 {offsets = [0, 0], sizes = [8, 6], strides = [1, 1]} : vector<8x7xf32> to vector<8x6xf32>
    %211 = tpu.concatenate %209, %210 in 1 : vector<8x54xf32>, vector<8x6xf32> -> vector<8x60xf32>
    %212 = vector.extract_strided_slice %173 {offsets = [0, 7], sizes = [8, 53], strides = [1, 1]} : vector<8x60xf32> to vector<8x53xf32>
    %213 = tpu.concatenate %212, %17 in 1 : vector<8x53xf32>, vector<8x7xf32> -> vector<8x60xf32>
    %214 = tpu.concatenate %175, %178, %181, %184, %187, %190, %193, %173, %196, %199, %202, %205, %208, %211, %213 in 0 : vector<8x60xf32>, vector<8x60xf32>, vector<8x60xf32>, vector<8x60xf32>, vector<8x60xf32>, vector<8x60xf32>, vector<8x60xf32>, vector<8x60xf32>, vector<8x60xf32>, vector<8x60xf32>, vector<8x60xf32>, vector<8x60xf32>, vector<8x60xf32>, vector<8x60xf32>, vector<8x60xf32> -> vector<120x60xf32>
    %c2 = arith.constant 2 : index
    %c0_38 = arith.constant 0 : index
    %c0_39 = arith.constant 0 : index
    %215 = vector.load %arg1[%c2, %c0_38, %c0_39] : memref<5x8x120xf32, #tpu.memory_space<vmem>>, vector<1x8x120xf32>
    %216 = vector.shape_cast %215 : vector<1x8x120xf32> to vector<8x120xf32>
    %cst_40 = arith.constant dense<0.000000e+00> : vector<8x60xf32>
    %217 = tpu.matmul %216, %214, %cst_40 {dimension_numbers = #tpu.dot_dimension_numbers<[1], [0], [0], [1], [0, 0, 1, 1], [], []>} : vector<8x120xf32>, vector<120x60xf32>, vector<8x60xf32> -> vector<8x60xf32>
    %218 = vector.broadcast %15 : vector<1x60xf32> to vector<8x60xf32>
    %219 = arith.mulf %217, %218 : vector<8x60xf32>
    %220 = arith.mulf %219, %219 : vector<8x60xf32>
    %221 = tpu.concatenate %219, %220 in 0 : vector<8x60xf32>, vector<8x60xf32> -> vector<16x60xf32>
    %cst_41 = arith.constant dense<0.000000e+00> : vector<16xf32>
    %222 = vector.multi_reduction <add>, %221, %cst_41 [1] : vector<16x60xf32> to vector<16xf32>
    %223 = vector.shape_cast %222 : vector<16xf32> to vector<16x1xf32>
    %224 = vector.extract_strided_slice %223 {offsets = [0, 0], sizes = [8, 1], strides = [1, 1]} : vector<16x1xf32> to vector<8x1xf32>
    %225 = vector.extract_strided_slice %223 {offsets = [8, 0], sizes = [8, 1], strides = [1, 1]} : vector<16x1xf32> to vector<8x1xf32>
    %cst_42 = arith.constant 3.125000e-02 : f32
    %226 = vector.broadcast %cst_42 : f32 to vector<8x1xf32>
    %227 = arith.mulf %224, %226 : vector<8x1xf32>
    %cst_43 = arith.constant 3.125000e-02 : f32
    %228 = vector.broadcast %cst_43 : f32 to vector<8x1xf32>
    %229 = arith.mulf %225, %228 : vector<8x1xf32>
    %230 = arith.mulf %227, %227 : vector<8x1xf32>
    %231 = arith.subf %229, %230 : vector<8x1xf32>
    %cst_44 = arith.constant 0.000000e+00 : f32
    %232 = vector.broadcast %cst_44 : f32 to vector<8x1xf32>
    %233 = arith.maximumf %231, %232 : vector<8x1xf32>
    %c2_45 = arith.constant 2 : index
    %c0_46 = arith.constant 0 : index
    %c0_47 = arith.constant 0 : index
    %234 = vector.load %arg2[%c2_45, %c0_46, %c0_47] : memref<5x8x1xf32, #tpu.memory_space<vmem>>, vector<1x8x1xf32>
    %235 = vector.shape_cast %234 : vector<1x8x1xf32> to vector<8x1xf32>
    %cst_48 = arith.constant 9.99999974E-6 : f32
    %236 = vector.broadcast %cst_48 : f32 to vector<8x1xf32>
    %237 = arith.addf %233, %236 : vector<8x1xf32>
    %238 = math.rsqrt %237 : vector<8x1xf32>
    %239 = arith.mulf %235, %238 : vector<8x1xf32>
    %c2_49 = arith.constant 2 : index
    %c0_50 = arith.constant 0 : index
    %c0_51 = arith.constant 0 : index
    %240 = vector.load %arg3[%c2_49, %c0_50, %c0_51] : memref<5x8x1xf32, #tpu.memory_space<vmem>>, vector<1x8x1xf32>
    %241 = vector.shape_cast %240 : vector<1x8x1xf32> to vector<8x1xf32>
    %242 = arith.mulf %227, %239 : vector<8x1xf32>
    %243 = arith.subf %241, %242 : vector<8x1xf32>
    %244 = vector.broadcast %239 : vector<8x1xf32> to vector<8x60xf32>
    %245 = arith.mulf %217, %244 : vector<8x60xf32>
    %246 = vector.broadcast %243 : vector<8x1xf32> to vector<8x60xf32>
    %247 = arith.addf %245, %246 : vector<8x60xf32>
    %cst_52 = arith.constant 0.000000e+00 : f32
    %248 = vector.broadcast %cst_52 : f32 to vector<8x60xf32>
    %249 = arith.maximumf %247, %248 : vector<8x60xf32>
    %250 = vector.broadcast %15 : vector<1x60xf32> to vector<8x60xf32>
    %251 = arith.mulf %249, %250 : vector<8x60xf32>
    %252 = vector.extract_strided_slice %251 {offsets = [0, 0], sizes = [8, 53], strides = [1, 1]} : vector<8x60xf32> to vector<8x53xf32>
    %253 = tpu.concatenate %17, %252 in 1 : vector<8x7xf32>, vector<8x53xf32> -> vector<8x60xf32>
    %254 = vector.extract_strided_slice %17 {offsets = [0, 0], sizes = [8, 6], strides = [1, 1]} : vector<8x7xf32> to vector<8x6xf32>
    %255 = vector.extract_strided_slice %251 {offsets = [0, 0], sizes = [8, 54], strides = [1, 1]} : vector<8x60xf32> to vector<8x54xf32>
    %256 = tpu.concatenate %254, %255 in 1 : vector<8x6xf32>, vector<8x54xf32> -> vector<8x60xf32>
    %257 = vector.extract_strided_slice %17 {offsets = [0, 0], sizes = [8, 5], strides = [1, 1]} : vector<8x7xf32> to vector<8x5xf32>
    %258 = vector.extract_strided_slice %251 {offsets = [0, 0], sizes = [8, 55], strides = [1, 1]} : vector<8x60xf32> to vector<8x55xf32>
    %259 = tpu.concatenate %257, %258 in 1 : vector<8x5xf32>, vector<8x55xf32> -> vector<8x60xf32>
    %260 = vector.extract_strided_slice %17 {offsets = [0, 0], sizes = [8, 4], strides = [1, 1]} : vector<8x7xf32> to vector<8x4xf32>
    %261 = vector.extract_strided_slice %251 {offsets = [0, 0], sizes = [8, 56], strides = [1, 1]} : vector<8x60xf32> to vector<8x56xf32>
    %262 = tpu.concatenate %260, %261 in 1 : vector<8x4xf32>, vector<8x56xf32> -> vector<8x60xf32>
    %263 = vector.extract_strided_slice %17 {offsets = [0, 0], sizes = [8, 3], strides = [1, 1]} : vector<8x7xf32> to vector<8x3xf32>
    %264 = vector.extract_strided_slice %251 {offsets = [0, 0], sizes = [8, 57], strides = [1, 1]} : vector<8x60xf32> to vector<8x57xf32>
    %265 = tpu.concatenate %263, %264 in 1 : vector<8x3xf32>, vector<8x57xf32> -> vector<8x60xf32>
    %266 = vector.extract_strided_slice %17 {offsets = [0, 0], sizes = [8, 2], strides = [1, 1]} : vector<8x7xf32> to vector<8x2xf32>
    %267 = vector.extract_strided_slice %251 {offsets = [0, 0], sizes = [8, 58], strides = [1, 1]} : vector<8x60xf32> to vector<8x58xf32>
    %268 = tpu.concatenate %266, %267 in 1 : vector<8x2xf32>, vector<8x58xf32> -> vector<8x60xf32>
    %269 = vector.extract_strided_slice %17 {offsets = [0, 0], sizes = [8, 1], strides = [1, 1]} : vector<8x7xf32> to vector<8x1xf32>
    %270 = vector.extract_strided_slice %251 {offsets = [0, 0], sizes = [8, 59], strides = [1, 1]} : vector<8x60xf32> to vector<8x59xf32>
    %271 = tpu.concatenate %269, %270 in 1 : vector<8x1xf32>, vector<8x59xf32> -> vector<8x60xf32>
    %272 = vector.extract_strided_slice %251 {offsets = [0, 1], sizes = [8, 59], strides = [1, 1]} : vector<8x60xf32> to vector<8x59xf32>
    %273 = vector.extract_strided_slice %17 {offsets = [0, 0], sizes = [8, 1], strides = [1, 1]} : vector<8x7xf32> to vector<8x1xf32>
    %274 = tpu.concatenate %272, %273 in 1 : vector<8x59xf32>, vector<8x1xf32> -> vector<8x60xf32>
    %275 = vector.extract_strided_slice %251 {offsets = [0, 2], sizes = [8, 58], strides = [1, 1]} : vector<8x60xf32> to vector<8x58xf32>
    %276 = vector.extract_strided_slice %17 {offsets = [0, 0], sizes = [8, 2], strides = [1, 1]} : vector<8x7xf32> to vector<8x2xf32>
    %277 = tpu.concatenate %275, %276 in 1 : vector<8x58xf32>, vector<8x2xf32> -> vector<8x60xf32>
    %278 = vector.extract_strided_slice %251 {offsets = [0, 3], sizes = [8, 57], strides = [1, 1]} : vector<8x60xf32> to vector<8x57xf32>
    %279 = vector.extract_strided_slice %17 {offsets = [0, 0], sizes = [8, 3], strides = [1, 1]} : vector<8x7xf32> to vector<8x3xf32>
    %280 = tpu.concatenate %278, %279 in 1 : vector<8x57xf32>, vector<8x3xf32> -> vector<8x60xf32>
    %281 = vector.extract_strided_slice %251 {offsets = [0, 4], sizes = [8, 56], strides = [1, 1]} : vector<8x60xf32> to vector<8x56xf32>
    %282 = vector.extract_strided_slice %17 {offsets = [0, 0], sizes = [8, 4], strides = [1, 1]} : vector<8x7xf32> to vector<8x4xf32>
    %283 = tpu.concatenate %281, %282 in 1 : vector<8x56xf32>, vector<8x4xf32> -> vector<8x60xf32>
    %284 = vector.extract_strided_slice %251 {offsets = [0, 5], sizes = [8, 55], strides = [1, 1]} : vector<8x60xf32> to vector<8x55xf32>
    %285 = vector.extract_strided_slice %17 {offsets = [0, 0], sizes = [8, 5], strides = [1, 1]} : vector<8x7xf32> to vector<8x5xf32>
    %286 = tpu.concatenate %284, %285 in 1 : vector<8x55xf32>, vector<8x5xf32> -> vector<8x60xf32>
    %287 = vector.extract_strided_slice %251 {offsets = [0, 6], sizes = [8, 54], strides = [1, 1]} : vector<8x60xf32> to vector<8x54xf32>
    %288 = vector.extract_strided_slice %17 {offsets = [0, 0], sizes = [8, 6], strides = [1, 1]} : vector<8x7xf32> to vector<8x6xf32>
    %289 = tpu.concatenate %287, %288 in 1 : vector<8x54xf32>, vector<8x6xf32> -> vector<8x60xf32>
    %290 = vector.extract_strided_slice %251 {offsets = [0, 7], sizes = [8, 53], strides = [1, 1]} : vector<8x60xf32> to vector<8x53xf32>
    %291 = tpu.concatenate %290, %17 in 1 : vector<8x53xf32>, vector<8x7xf32> -> vector<8x60xf32>
    %292 = tpu.concatenate %253, %256, %259, %262, %265, %268, %271, %251, %274, %277, %280, %283, %286, %289, %291 in 0 : vector<8x60xf32>, vector<8x60xf32>, vector<8x60xf32>, vector<8x60xf32>, vector<8x60xf32>, vector<8x60xf32>, vector<8x60xf32>, vector<8x60xf32>, vector<8x60xf32>, vector<8x60xf32>, vector<8x60xf32>, vector<8x60xf32>, vector<8x60xf32>, vector<8x60xf32>, vector<8x60xf32> -> vector<120x60xf32>
    %c3 = arith.constant 3 : index
    %c0_53 = arith.constant 0 : index
    %c0_54 = arith.constant 0 : index
    %293 = vector.load %arg1[%c3, %c0_53, %c0_54] : memref<5x8x120xf32, #tpu.memory_space<vmem>>, vector<1x8x120xf32>
    %294 = vector.shape_cast %293 : vector<1x8x120xf32> to vector<8x120xf32>
    %cst_55 = arith.constant dense<0.000000e+00> : vector<8x60xf32>
    %295 = tpu.matmul %294, %292, %cst_55 {dimension_numbers = #tpu.dot_dimension_numbers<[1], [0], [0], [1], [0, 0, 1, 1], [], []>} : vector<8x120xf32>, vector<120x60xf32>, vector<8x60xf32> -> vector<8x60xf32>
    %296 = vector.broadcast %15 : vector<1x60xf32> to vector<8x60xf32>
    %297 = arith.mulf %295, %296 : vector<8x60xf32>
    %298 = arith.mulf %297, %297 : vector<8x60xf32>
    %299 = tpu.concatenate %297, %298 in 0 : vector<8x60xf32>, vector<8x60xf32> -> vector<16x60xf32>
    %cst_56 = arith.constant dense<0.000000e+00> : vector<16xf32>
    %300 = vector.multi_reduction <add>, %299, %cst_56 [1] : vector<16x60xf32> to vector<16xf32>
    %301 = vector.shape_cast %300 : vector<16xf32> to vector<16x1xf32>
    %302 = vector.extract_strided_slice %301 {offsets = [0, 0], sizes = [8, 1], strides = [1, 1]} : vector<16x1xf32> to vector<8x1xf32>
    %303 = vector.extract_strided_slice %301 {offsets = [8, 0], sizes = [8, 1], strides = [1, 1]} : vector<16x1xf32> to vector<8x1xf32>
    %cst_57 = arith.constant 3.125000e-02 : f32
    %304 = vector.broadcast %cst_57 : f32 to vector<8x1xf32>
    %305 = arith.mulf %302, %304 : vector<8x1xf32>
    %cst_58 = arith.constant 3.125000e-02 : f32
    %306 = vector.broadcast %cst_58 : f32 to vector<8x1xf32>
    %307 = arith.mulf %303, %306 : vector<8x1xf32>
    %308 = arith.mulf %305, %305 : vector<8x1xf32>
    %309 = arith.subf %307, %308 : vector<8x1xf32>
    %cst_59 = arith.constant 0.000000e+00 : f32
    %310 = vector.broadcast %cst_59 : f32 to vector<8x1xf32>
    %311 = arith.maximumf %309, %310 : vector<8x1xf32>
    %c3_60 = arith.constant 3 : index
    %c0_61 = arith.constant 0 : index
    %c0_62 = arith.constant 0 : index
    %312 = vector.load %arg2[%c3_60, %c0_61, %c0_62] : memref<5x8x1xf32, #tpu.memory_space<vmem>>, vector<1x8x1xf32>
    %313 = vector.shape_cast %312 : vector<1x8x1xf32> to vector<8x1xf32>
    %cst_63 = arith.constant 9.99999974E-6 : f32
    %314 = vector.broadcast %cst_63 : f32 to vector<8x1xf32>
    %315 = arith.addf %311, %314 : vector<8x1xf32>
    %316 = math.rsqrt %315 : vector<8x1xf32>
    %317 = arith.mulf %313, %316 : vector<8x1xf32>
    %c3_64 = arith.constant 3 : index
    %c0_65 = arith.constant 0 : index
    %c0_66 = arith.constant 0 : index
    %318 = vector.load %arg3[%c3_64, %c0_65, %c0_66] : memref<5x8x1xf32, #tpu.memory_space<vmem>>, vector<1x8x1xf32>
    %319 = vector.shape_cast %318 : vector<1x8x1xf32> to vector<8x1xf32>
    %320 = arith.mulf %305, %317 : vector<8x1xf32>
    %321 = arith.subf %319, %320 : vector<8x1xf32>
    %322 = vector.broadcast %317 : vector<8x1xf32> to vector<8x60xf32>
    %323 = arith.mulf %295, %322 : vector<8x60xf32>
    %324 = vector.broadcast %321 : vector<8x1xf32> to vector<8x60xf32>
    %325 = arith.addf %323, %324 : vector<8x60xf32>
    %cst_67 = arith.constant 0.000000e+00 : f32
    %326 = vector.broadcast %cst_67 : f32 to vector<8x60xf32>
    %327 = arith.maximumf %325, %326 : vector<8x60xf32>
    %328 = vector.broadcast %15 : vector<1x60xf32> to vector<8x60xf32>
    %329 = arith.mulf %327, %328 : vector<8x60xf32>
    %330 = vector.extract_strided_slice %329 {offsets = [0, 0], sizes = [8, 53], strides = [1, 1]} : vector<8x60xf32> to vector<8x53xf32>
    %331 = tpu.concatenate %17, %330 in 1 : vector<8x7xf32>, vector<8x53xf32> -> vector<8x60xf32>
    %332 = vector.extract_strided_slice %17 {offsets = [0, 0], sizes = [8, 6], strides = [1, 1]} : vector<8x7xf32> to vector<8x6xf32>
    %333 = vector.extract_strided_slice %329 {offsets = [0, 0], sizes = [8, 54], strides = [1, 1]} : vector<8x60xf32> to vector<8x54xf32>
    %334 = tpu.concatenate %332, %333 in 1 : vector<8x6xf32>, vector<8x54xf32> -> vector<8x60xf32>
    %335 = vector.extract_strided_slice %17 {offsets = [0, 0], sizes = [8, 5], strides = [1, 1]} : vector<8x7xf32> to vector<8x5xf32>
    %336 = vector.extract_strided_slice %329 {offsets = [0, 0], sizes = [8, 55], strides = [1, 1]} : vector<8x60xf32> to vector<8x55xf32>
    %337 = tpu.concatenate %335, %336 in 1 : vector<8x5xf32>, vector<8x55xf32> -> vector<8x60xf32>
    %338 = vector.extract_strided_slice %17 {offsets = [0, 0], sizes = [8, 4], strides = [1, 1]} : vector<8x7xf32> to vector<8x4xf32>
    %339 = vector.extract_strided_slice %329 {offsets = [0, 0], sizes = [8, 56], strides = [1, 1]} : vector<8x60xf32> to vector<8x56xf32>
    %340 = tpu.concatenate %338, %339 in 1 : vector<8x4xf32>, vector<8x56xf32> -> vector<8x60xf32>
    %341 = vector.extract_strided_slice %17 {offsets = [0, 0], sizes = [8, 3], strides = [1, 1]} : vector<8x7xf32> to vector<8x3xf32>
    %342 = vector.extract_strided_slice %329 {offsets = [0, 0], sizes = [8, 57], strides = [1, 1]} : vector<8x60xf32> to vector<8x57xf32>
    %343 = tpu.concatenate %341, %342 in 1 : vector<8x3xf32>, vector<8x57xf32> -> vector<8x60xf32>
    %344 = vector.extract_strided_slice %17 {offsets = [0, 0], sizes = [8, 2], strides = [1, 1]} : vector<8x7xf32> to vector<8x2xf32>
    %345 = vector.extract_strided_slice %329 {offsets = [0, 0], sizes = [8, 58], strides = [1, 1]} : vector<8x60xf32> to vector<8x58xf32>
    %346 = tpu.concatenate %344, %345 in 1 : vector<8x2xf32>, vector<8x58xf32> -> vector<8x60xf32>
    %347 = vector.extract_strided_slice %17 {offsets = [0, 0], sizes = [8, 1], strides = [1, 1]} : vector<8x7xf32> to vector<8x1xf32>
    %348 = vector.extract_strided_slice %329 {offsets = [0, 0], sizes = [8, 59], strides = [1, 1]} : vector<8x60xf32> to vector<8x59xf32>
    %349 = tpu.concatenate %347, %348 in 1 : vector<8x1xf32>, vector<8x59xf32> -> vector<8x60xf32>
    %350 = vector.extract_strided_slice %329 {offsets = [0, 1], sizes = [8, 59], strides = [1, 1]} : vector<8x60xf32> to vector<8x59xf32>
    %351 = vector.extract_strided_slice %17 {offsets = [0, 0], sizes = [8, 1], strides = [1, 1]} : vector<8x7xf32> to vector<8x1xf32>
    %352 = tpu.concatenate %350, %351 in 1 : vector<8x59xf32>, vector<8x1xf32> -> vector<8x60xf32>
    %353 = vector.extract_strided_slice %329 {offsets = [0, 2], sizes = [8, 58], strides = [1, 1]} : vector<8x60xf32> to vector<8x58xf32>
    %354 = vector.extract_strided_slice %17 {offsets = [0, 0], sizes = [8, 2], strides = [1, 1]} : vector<8x7xf32> to vector<8x2xf32>
    %355 = tpu.concatenate %353, %354 in 1 : vector<8x58xf32>, vector<8x2xf32> -> vector<8x60xf32>
    %356 = vector.extract_strided_slice %329 {offsets = [0, 3], sizes = [8, 57], strides = [1, 1]} : vector<8x60xf32> to vector<8x57xf32>
    %357 = vector.extract_strided_slice %17 {offsets = [0, 0], sizes = [8, 3], strides = [1, 1]} : vector<8x7xf32> to vector<8x3xf32>
    %358 = tpu.concatenate %356, %357 in 1 : vector<8x57xf32>, vector<8x3xf32> -> vector<8x60xf32>
    %359 = vector.extract_strided_slice %329 {offsets = [0, 4], sizes = [8, 56], strides = [1, 1]} : vector<8x60xf32> to vector<8x56xf32>
    %360 = vector.extract_strided_slice %17 {offsets = [0, 0], sizes = [8, 4], strides = [1, 1]} : vector<8x7xf32> to vector<8x4xf32>
    %361 = tpu.concatenate %359, %360 in 1 : vector<8x56xf32>, vector<8x4xf32> -> vector<8x60xf32>
    %362 = vector.extract_strided_slice %329 {offsets = [0, 5], sizes = [8, 55], strides = [1, 1]} : vector<8x60xf32> to vector<8x55xf32>
    %363 = vector.extract_strided_slice %17 {offsets = [0, 0], sizes = [8, 5], strides = [1, 1]} : vector<8x7xf32> to vector<8x5xf32>
    %364 = tpu.concatenate %362, %363 in 1 : vector<8x55xf32>, vector<8x5xf32> -> vector<8x60xf32>
    %365 = vector.extract_strided_slice %329 {offsets = [0, 6], sizes = [8, 54], strides = [1, 1]} : vector<8x60xf32> to vector<8x54xf32>
    %366 = vector.extract_strided_slice %17 {offsets = [0, 0], sizes = [8, 6], strides = [1, 1]} : vector<8x7xf32> to vector<8x6xf32>
    %367 = tpu.concatenate %365, %366 in 1 : vector<8x54xf32>, vector<8x6xf32> -> vector<8x60xf32>
    %368 = vector.extract_strided_slice %329 {offsets = [0, 7], sizes = [8, 53], strides = [1, 1]} : vector<8x60xf32> to vector<8x53xf32>
    %369 = tpu.concatenate %368, %17 in 1 : vector<8x53xf32>, vector<8x7xf32> -> vector<8x60xf32>
    %370 = tpu.concatenate %331, %334, %337, %340, %343, %346, %349, %329, %352, %355, %358, %361, %364, %367, %369 in 0 : vector<8x60xf32>, vector<8x60xf32>, vector<8x60xf32>, vector<8x60xf32>, vector<8x60xf32>, vector<8x60xf32>, vector<8x60xf32>, vector<8x60xf32>, vector<8x60xf32>, vector<8x60xf32>, vector<8x60xf32>, vector<8x60xf32>, vector<8x60xf32>, vector<8x60xf32>, vector<8x60xf32> -> vector<120x60xf32>
    %c4 = arith.constant 4 : index
    %c0_68 = arith.constant 0 : index
    %c0_69 = arith.constant 0 : index
    %371 = vector.load %arg1[%c4, %c0_68, %c0_69] : memref<5x8x120xf32, #tpu.memory_space<vmem>>, vector<1x8x120xf32>
    %372 = vector.shape_cast %371 : vector<1x8x120xf32> to vector<8x120xf32>
    %cst_70 = arith.constant dense<0.000000e+00> : vector<8x60xf32>
    %373 = tpu.matmul %372, %370, %cst_70 {dimension_numbers = #tpu.dot_dimension_numbers<[1], [0], [0], [1], [0, 0, 1, 1], [], []>} : vector<8x120xf32>, vector<120x60xf32>, vector<8x60xf32> -> vector<8x60xf32>
    %374 = vector.broadcast %15 : vector<1x60xf32> to vector<8x60xf32>
    %375 = arith.mulf %373, %374 : vector<8x60xf32>
    %376 = arith.mulf %375, %375 : vector<8x60xf32>
    %377 = tpu.concatenate %375, %376 in 0 : vector<8x60xf32>, vector<8x60xf32> -> vector<16x60xf32>
    %cst_71 = arith.constant dense<0.000000e+00> : vector<16xf32>
    %378 = vector.multi_reduction <add>, %377, %cst_71 [1] : vector<16x60xf32> to vector<16xf32>
    %379 = vector.shape_cast %378 : vector<16xf32> to vector<16x1xf32>
    %380 = vector.extract_strided_slice %379 {offsets = [0, 0], sizes = [8, 1], strides = [1, 1]} : vector<16x1xf32> to vector<8x1xf32>
    %381 = vector.extract_strided_slice %379 {offsets = [8, 0], sizes = [8, 1], strides = [1, 1]} : vector<16x1xf32> to vector<8x1xf32>
    %cst_72 = arith.constant 3.125000e-02 : f32
    %382 = vector.broadcast %cst_72 : f32 to vector<8x1xf32>
    %383 = arith.mulf %380, %382 : vector<8x1xf32>
    %cst_73 = arith.constant 3.125000e-02 : f32
    %384 = vector.broadcast %cst_73 : f32 to vector<8x1xf32>
    %385 = arith.mulf %381, %384 : vector<8x1xf32>
    %386 = arith.mulf %383, %383 : vector<8x1xf32>
    %387 = arith.subf %385, %386 : vector<8x1xf32>
    %cst_74 = arith.constant 0.000000e+00 : f32
    %388 = vector.broadcast %cst_74 : f32 to vector<8x1xf32>
    %389 = arith.maximumf %387, %388 : vector<8x1xf32>
    %c4_75 = arith.constant 4 : index
    %c0_76 = arith.constant 0 : index
    %c0_77 = arith.constant 0 : index
    %390 = vector.load %arg2[%c4_75, %c0_76, %c0_77] : memref<5x8x1xf32, #tpu.memory_space<vmem>>, vector<1x8x1xf32>
    %391 = vector.shape_cast %390 : vector<1x8x1xf32> to vector<8x1xf32>
    %cst_78 = arith.constant 9.99999974E-6 : f32
    %392 = vector.broadcast %cst_78 : f32 to vector<8x1xf32>
    %393 = arith.addf %389, %392 : vector<8x1xf32>
    %394 = math.rsqrt %393 : vector<8x1xf32>
    %395 = arith.mulf %391, %394 : vector<8x1xf32>
    %c4_79 = arith.constant 4 : index
    %c0_80 = arith.constant 0 : index
    %c0_81 = arith.constant 0 : index
    %396 = vector.load %arg3[%c4_79, %c0_80, %c0_81] : memref<5x8x1xf32, #tpu.memory_space<vmem>>, vector<1x8x1xf32>
    %397 = vector.shape_cast %396 : vector<1x8x1xf32> to vector<8x1xf32>
    %398 = arith.mulf %383, %395 : vector<8x1xf32>
    %399 = arith.subf %397, %398 : vector<8x1xf32>
    %400 = vector.broadcast %395 : vector<8x1xf32> to vector<8x60xf32>
    %401 = arith.mulf %373, %400 : vector<8x60xf32>
    %402 = vector.broadcast %399 : vector<8x1xf32> to vector<8x60xf32>
    %403 = arith.addf %401, %402 : vector<8x60xf32>
    %cst_82 = arith.constant 0.000000e+00 : f32
    %404 = vector.broadcast %cst_82 : f32 to vector<8x60xf32>
    %405 = arith.maximumf %403, %404 : vector<8x60xf32>
    %406 = vector.broadcast %15 : vector<1x60xf32> to vector<8x60xf32>
    %407 = arith.mulf %405, %406 : vector<8x60xf32>
    %c0_83 = arith.constant 0 : index
    %c0_84 = arith.constant 0 : index
    %408 = vector.load %arg4[%c0_83, %c0_84] : memref<8x60xf32, #tpu.memory_space<vmem>>, vector<8x60xf32>
    tpu.vector_store %arg4[%c0_83, %c0_84], %407 {strides = array<i32>} : memref<8x60xf32, #tpu.memory_space<vmem>>, vector<8x60xf32>,
    return
  }
}

</mosaic_0001>

<bundles_post_ra>
// kernel: tpu_custom_call.1
= control target key start
LH: loop header
LB: loop body
LE: loop exit
PB: predicated region body
PF: predicated region fallthrough
CT: control target
= control target key end

     0   :  { %s1207_s0 = inlined_call_operand.vmem [shape: f32[8,60], index: 0, kind: input, shape index: {}]   ;;  %s1208_s1 = inlined_call_operand.vmem [shape: f32[5,8,120], index: 1, kind: input, shape index: {}]   ;;  %s1209_s2 = inlined_call_operand.vmem [shape: f32[5,8,1], index: 2, kind: input, shape index: {}]   ;;  %s1210_s3 = inlined_call_operand.vmem [shape: f32[5,8,1], index: 3, kind: input, shape index: {}]   ;;  %s1211_s4 = inlined_call_operand.hbm [shape: f32[8,60], index: 4, kind: output, shape index: {}]  }
   0x1   :  { %v36_v0 = vld [vmem:[%s1207_s0] sm:$0xff] }
   0x2   :  { %9 = vsyncpa [#allocation3], 0  ;;  %s882_s17 = smov 121   ;;  %s883_s18 = smov 123   ;;  %vm106_vm0 = vcmask 433152   ;;  %vm101_vm1 = vcmask 441344   ;;  %v18_v27 = vlaneseq }
   0x3   :  { %103 = vrot.lane.b32.xlu0 %v36_v0, %s882_s17  ;;  %93 = vrot.lane.b32.xlu1 %v36_v0, %s883_s18  ;;  %s884_s19 = smov 125   ;;  %s885_s20 = smov 122   ;;  %vm96_vm2 = vcmask 449536   ;;  %vm91_vm3 = vcmask 457728   ;;  %vm1214_vm4 = vcmask 465920   ;;  %vm1213_vm5 = vcmask 474112  }
   0x4   :  { %83 = vrot.lane.b32.xlu2 %v36_v0, %s884_s19  ;;  %s886_s21 = smov 124   ;;  %s887_s22 = smov 126   ;;  %vm1212_vm6 = vcmask 482304   ;;  %vm71_vm7 = vcmask 7168   ;;  %vm66_vm8 = vcmask 15360   ;;  %vm61_vm10 = vcmask 23552  }
   0x5   :  { %s888_s0 = smov 127   ;;  %s889_s23 = smov 1   ;;  %vm949_vm9 = vmneg %vm71_vm7  ;;  %vm56_vm12 = vcmask 31744   ;;  %vm51_vm14 = vcmask 39936   ;;  %vm46_vm7 = vcmask 48128   ;;  %v108_v22 = vld [vmem:[%s1208_s1] sm:$0xff] }
   0x6   :  { %s890_s24 = smov 2   ;;  %s891_s25 = smov 3   ;;  %vm953_vm11 = vmneg %vm66_vm8  ;;  %v896_v23 = vmov 30.0   ;;  %v19_v29 = vand.u32 127, %v18_v27  ;;  %v897_v37 = vmov 0.0   ;;  %v898_v44 = vmov 0  }
   0x7   :  { %s892_s26 = smov 4   ;;  %s893_s27 = smov 5   ;;  %vm959_vm13 = vmneg %vm61_vm10  ;;  %vm41_vm10 = vcmask 56320   ;;  %844 = vrcp.f32 %v896_v23  ;;  %842 = vset.pattern.permute.xlu1 %v898_v44  ;;  %843 = vset.pattern.permute.xlu0 %v898_v44  ;;  %v147_v58 = vld [vmem:[%s1209_s2] sm:$0xff]  ;;  %v724_v27 = vld [vmem:[%s1208_s1 + $0x8] sm:$0xff] }
   0x8   :  { %s894_s28 = smov 6   ;;  %s895_s29 = smov 7   ;;  %vm965_vm15 = vmneg %vm56_vm12  ;;  %v20_v31 = vcvt.s32.f32 %v19_v29  ;;  %v160_v63 = vld [vmem:[%s1210_s3] sm:$0xff] }
   0x9   :  { %vm971_vm8 = vmneg %vm51_vm14  ;;  %vm1215_vm14 = vcmask 982016   ;;  %v799_v10 = vld [vmem:[%s1208_s1 + $0x20] sm:$0xff] }
   0xa   :  { %vm983_vm12 = vmneg %vm41_vm10 }
   0xb   :  { %98 = vrot.lane.b32.xlu0 %v36_v0, %s885_s20  ;;  %88 = vrot.lane.b32.xlu1 %v36_v0, %s886_s21 }
   0xc   :  { %78 = vrot.lane.b32.xlu2 %v36_v0, %s887_s22 }
   0xd   :  { %v845_v24 = vpop.eup %844 }
   0xe   :  { %v22_v25 = vmul.f32 30.0, %v845_v24 }
  0x10   :  { %v23_v26 = vsub.f32 1.0, %v22_v25 }
  0x12   :  { %v24_v28 = vmul.f32 %v845_v24, %v23_v26 }
  0x13   :  { %73 = vrot.lane.b32.xlu0 %v36_v0, %s888_s0  ;;  %68 = vrot.lane.b32.xlu1 %v36_v0, %s889_s23 }
  0x14   :  { %63 = vrot.lane.b32.xlu2 %v36_v0, %s890_s24  ;;  %v25_v30 = vadd.f32 %v845_v24, %v24_v28 }
  0x1b   :  { %58 = vrot.lane.b32.xlu0 %v36_v0, %s891_s25  ;;  %53 = vrot.lane.b32.xlu1 %v36_v0, %s892_s26 }
  0x1c   :  { %48 = vrot.lane.b32.xlu2 %v36_v0, %s893_s27 }
  0x23   :  { %43 = vrot.lane.b32.xlu0 %v36_v0, %s894_s28  ;;  %38 = vrot.lane.b32.xlu1 %v36_v0, %s895_s29 }
  0x5e   :  { %v84_v1 = vpop.permute.xlu2 %83 }
  0x66   :  { %v79_v4 = vpop.permute.xlu2 %78 }
  0x6e   :  { %v64_v9 = vpop.permute.xlu2 %63 }
  0x75   :  { %v104_v2 = vpop.permute.xlu0 %103  ;;  %v94_v3 = vpop.permute.xlu1 %93 }
  0x76   :  { %702 = vmatpush.msk.msra.mxu0 %vm106_vm0, %v104_v2  ;;  %v49_v16 = vpop.permute.xlu2 %48 }
  0x7d   :  { %v99_v5 = vpop.permute.xlu0 %98  ;;  %v89_v6 = vpop.permute.xlu1 %88 }
  0x7e   :  { %703 = vmatpush.msk.msra.mxu0 %vm101_vm1, %v99_v5 }
  0x80   :  { %704 = vmatpush.msk.msra.mxu0 %vm96_vm2, %v94_v3 }
  0x82   :  { %705 = vmatpush.msk.msra.mxu0 %vm91_vm3, %v89_v6 }
  0x84   :  { %706 = vmatpush.msk.msra.mxu0 %vm1214_vm4, %v84_v1 }
  0x85   :  { %v74_v7 = vpop.permute.xlu0 %73  ;;  %v69_v8 = vpop.permute.xlu1 %68 }
  0x86   :  { %707 = vmatpush.msk.msra.mxu0 %vm1213_vm5, %v79_v4 }
  0x88   :  { %708 = vmatpush.msk.msra.mxu0 %vm1212_vm6, %v74_v7  ;;  %vm977_vm6 = vmneg %vm46_vm7  ;;  %vm26_vm7 = vweird.f32 %v845_v24 }
  0x89   :  { %v27_v32 = vsel %vm26_vm7, %v845_v24, %v25_v30 }
  0x8a   :  { %121 = vmatpush.msra.mxu0 %v36_v0  ;;  %v28_v33 = vmul.f32 %v27_v32, %v20_v31 }
  0x8c   :  { %710 = vmatpush.msk.msra.mxu0 %vm949_vm9, %v69_v8  ;;  %v29_v34 = vfloor.f32 %v28_v33 }
  0x8d   :  { %v59_v12 = vpop.permute.xlu0 %58  ;;  %v54_v13 = vpop.permute.xlu1 %53 }
  0x8e   :  { %712 = vmatpush.msk.msra.mxu0 %vm953_vm11, %v64_v9  ;;  %v30_v35 = vmul.f32 30.0, %v29_v34 }
  0x90   :  { %714 = vmatpush.msk.msra.mxu0 %vm959_vm13, %v59_v12  ;;  %v31_v36 = vsub.f32 %v20_v31, %v30_v35 }
  0x92   :  { %716 = vmatpush.msk.msra.mxu0 %vm965_vm15, %v54_v13  ;;  %vm32_vm10 = vcmp.ge.f32.partialorder %v31_v36, 7.0  ;;  %vm33_vm5 = vcmp.lt.f32.partialorder %v31_v36, 23.0 }
  0x93   :  { %vm34_vm4 = vmand %vm32_vm10, %vm33_vm5  ;;  %vm1230_vm10 = vcmask 465920  }
  0x94   :  { %718 = vmatpush.msk.msra.mxu0 %vm971_vm8, %v49_v16  ;;  %v995_v38 = vsel %vm34_vm4, 1.0, %v897_v37 }
  0x95   :  { %v44_v19 = vpop.permute.xlu0 %43  ;;  %v39_v20 = vpop.permute.xlu1 %38 }
  0x96   :  { %720 = vmatpush.msk.msra.mxu0 %vm977_vm6, %v44_v19 }
  0x98   :  { %722 = vmatpush.msk.msra.mxu0 %vm983_vm12, %v39_v20 }
  0x99   :  { %723 = vmatmul.msk.f32.vlgmr.msra.gmra.mxu0 %vm1215_vm14, %v108_v22  ;;  %vm135_vm14 = vcmask 490496  }
 0x116   :  { %v130_v39 = vpop.f32.mrf.mxu0 }
 0x117   :  { %v133_v40 = vmul.f32 %v130_v39, %v995_v38 }
 0x119   :  { %v136_v41 = vsel %vm135_vm14, %v133_v40, 0.0  ;;  %v134_v42 = vmul.f32 %v133_v40, %v133_v40 }
 0x11a   :  { %137 = vadd.xlane.f32.xlu2 %v136_v41 }
 0x11b   :  { %v139_v43 = vsel %vm135_vm14, %v134_v42, 0.0 }
 0x11c   :  { %140 = vadd.xlane.f32.xlu0 %v139_v43 }
 0x18d   :  { %v138_v45 = vpop.xlane.xlu2 %137 }
 0x18e   :  { %v142_v46 = vmul.f32 0.03125, %v138_v45 }
 0x18f   :  { %v141_v47 = vpop.xlane.xlu0 %140 }
 0x190   :  { %v144_v48 = vmul.f32 %v142_v46, %v142_v46  ;;  %v143_v49 = vmul.f32 0.03125, %v141_v47 }
 0x192   :  { %v145_v50 = vsub.f32 %v143_v49, %v144_v48  ;;  %v747_v48 = vld [vmem:[%s1209_s2 + $0x8] sm:$0xff] }
 0x194   :  { %v146_v51 = vmax.f32 %v145_v50, 0.0 }
 0x196   :  { %v148_v52 = vadd.f32 1e-05, %v146_v51 }
 0x198   :  { %846 = vrsqrt.f32 %v148_v52  ;;  %vm155_vm5 = vweird.f32 %v148_v52 }
 0x19e   :  { %v847_v53 = vpop.eup %846 }
 0x19f   :  { %v150_v54 = vmul.f32 %v847_v53, %v148_v52  ;;  %vm156_vm4 = vweird.f32 %v847_v53 }
 0x1a0   :  { %vm157_vm7 = vmor %vm155_vm5, %vm156_vm4  ;;  %vm1231_vm4 = vcmask 474112   ;;  %vm1232_vm5 = vcmask 482304  }
 0x1a1   :  { %v151_v55 = vmul.f32 %v847_v53, %v150_v54 }
 0x1a3   :  { %v152_v56 = vmul.f32 0.5, %v151_v55 }
 0x1a5   :  { %v153_v57 = vsub.f32 1.5, %v152_v56 }
 0x1a7   :  { %v154_v59 = vmul.f32 %v847_v53, %v153_v57 }
 0x1a9   :  { %v158_v60 = vsel %vm157_vm7, %v847_v53, %v154_v59  ;;  %vm1233_vm7 = vcmask 982016   ;;  %v748_v53 = vld [vmem:[%s1210_s3 + $0x8] sm:$0xff] }
 0x1aa   :  { %v159_v61 = vmul.f32 %v158_v60, %v147_v58 }
 0x1ac   :  { %165 = vperm.xlu1 %842, %v159_v61   ;;  %v161_v62 = vmul.f32 %v159_v61, %v142_v46 }
 0x1ae   :  { %v162_v0 = vsub.f32 %v160_v63, %v161_v62 }
 0x1b4   :  { %171 = vperm.xlu1 %842, %v162_v0  }
 0x21e   :  { %v166_v1 = vpop.permute.xlu1 %165 }
 0x21f   :  { %v168_v2 = vmul.f32 %v166_v1, %v130_v39 }
 0x226   :  { %v172_v3 = vpop.permute.xlu1 %171 }
 0x227   :  { %v174_v4 = vadd.f32 %v172_v3, %v168_v2 }
 0x229   :  { %v175_v5 = vmax.f32 %v174_v4, 0.0 }
 0x22b   :  { %v176_v6 = vmul.f32 %v175_v5, %v995_v38 }
 0x22d   :  { %210 = vrot.lane.b32.xlu0 %v176_v6, %s887_s22  ;;  %218 = vrot.lane.b32.xlu2 %v176_v6, %s886_s21 }
 0x22e   :  { %230 = vrot.lane.b32.xlu1 %v176_v6, %s882_s17 }
 0x235   :  { %194 = vrot.lane.b32.xlu0 %v176_v6, %s891_s25  ;;  %198 = vrot.lane.b32.xlu2 %v176_v6, %s890_s24 }
 0x236   :  { %226 = vrot.lane.b32.xlu1 %v176_v6, %s885_s20 }
 0x23d   :  { %182 = vrot.lane.b32.xlu0 %v176_v6, %s894_s28  ;;  %186 = vrot.lane.b32.xlu2 %v176_v6, %s893_s27 }
 0x23e   :  { %222 = vrot.lane.b32.xlu1 %v176_v6, %s883_s18 }
 0x246   :  { %214 = vrot.lane.b32.xlu1 %v176_v6, %s884_s19 }
 0x24e   :  { %206 = vrot.lane.b32.xlu1 %v176_v6, %s888_s0 }
 0x256   :  { %202 = vrot.lane.b32.xlu1 %v176_v6, %s889_s23 }
 0x25e   :  { %190 = vrot.lane.b32.xlu1 %v176_v6, %s892_s26 }
 0x266   :  { %178 = vrot.lane.b32.xlu1 %v176_v6, %s895_s29 }
 0x287   :  { %v219_v12 = vpop.permute.xlu2 %218 }
 0x28f   :  { %v199_v20 = vpop.permute.xlu2 %198 }
 0x297   :  { %v187_v25 = vpop.permute.xlu2 %186 }
 0x29f   :  { %v211_v16 = vpop.permute.xlu0 %210 }
 0x2a0   :  { %v231_v7 = vpop.permute.xlu1 %230 }
 0x2a1   :  { %725 = vmatpush.msk.msra.mxu1 %vm106_vm0, %v231_v7 }
 0x2a7   :  { %v195_v23 = vpop.permute.xlu0 %194 }
 0x2a8   :  { %v227_v8 = vpop.permute.xlu1 %226 }
 0x2a9   :  { %726 = vmatpush.msk.msra.mxu1 %vm101_vm1, %v227_v8 }
 0x2af   :  { %v183_v26 = vpop.permute.xlu0 %182 }
 0x2b0   :  { %v223_v9 = vpop.permute.xlu1 %222 }
 0x2b1   :  { %727 = vmatpush.msk.msra.mxu1 %vm96_vm2, %v223_v9 }
 0x2b3   :  { %728 = vmatpush.msk.msra.mxu1 %vm91_vm3, %v219_v12  ;;  %v749_v12 = vld [vmem:[%s1208_s1 + $0x10] sm:$0xff] }
 0x2b8   :  { %v215_v13 = vpop.permute.xlu1 %214 }
 0x2b9   :  { %729 = vmatpush.msk.msra.mxu1 %vm1230_vm10, %v215_v13 }
 0x2bb   :  { %730 = vmatpush.msk.msra.mxu1 %vm1231_vm4, %v211_v16 }
 0x2c0   :  { %v207_v19 = vpop.permute.xlu1 %206 }
 0x2c1   :  { %731 = vmatpush.msk.msra.mxu1 %vm1232_vm5, %v207_v19 }
 0x2c3   :  { %247 = vmatpush.msra.mxu1 %v176_v6 }
 0x2c8   :  { %v203_v22 = vpop.permute.xlu1 %202 }
 0x2c9   :  { %733 = vmatpush.msk.msra.mxu1 %vm949_vm9, %v203_v22 }
 0x2cb   :  { %735 = vmatpush.msk.msra.mxu1 %vm953_vm11, %v199_v20 }
 0x2cd   :  { %737 = vmatpush.msk.msra.mxu1 %vm959_vm13, %v195_v23 }
 0x2d0   :  { %v191_v24 = vpop.permute.xlu1 %190 }
 0x2d1   :  { %739 = vmatpush.msk.msra.mxu1 %vm965_vm15, %v191_v24 }
 0x2d3   :  { %741 = vmatpush.msk.msra.mxu1 %vm971_vm8, %v187_v25 }
 0x2d5   :  { %743 = vmatpush.msk.msra.mxu1 %vm977_vm6, %v183_v26 }
 0x2d8   :  { %v179_v28 = vpop.permute.xlu1 %178 }
 0x2d9   :  { %745 = vmatpush.msk.msra.mxu1 %vm983_vm12, %v179_v28 }
 0x2da   :  { %746 = vmatmul.msk.f32.vlgmr.msra.gmra.mxu1 %vm1233_vm7, %v724_v27  ;;  %vm1234_vm7 = vcmask 465920  }
 0x357   :  { %v256_v29 = vpop.f32.mrf.mxu1 }
 0x358   :  { %v259_v30 = vmul.f32 %v256_v29, %v995_v38 }
 0x35a   :  { %v261_v31 = vsel %vm135_vm14, %v259_v30, 0.0  ;;  %v260_v32 = vmul.f32 %v259_v30, %v259_v30 }
 0x35b   :  { %262 = vadd.xlane.f32.xlu2 %v261_v31 }
 0x35c   :  { %v264_v33 = vsel %vm135_vm14, %v260_v32, 0.0 }
 0x35d   :  { %265 = vadd.xlane.f32.xlu0 %v264_v33 }
 0x3ce   :  { %v263_v34 = vpop.xlane.xlu2 %262 }
 0x3cf   :  { %v267_v35 = vmul.f32 0.03125, %v263_v34 }
 0x3d0   :  { %v266_v36 = vpop.xlane.xlu0 %265 }
 0x3d1   :  { %v269_v37 = vmul.f32 %v267_v35, %v267_v35  ;;  %v268_v39 = vmul.f32 0.03125, %v266_v36 }
 0x3d3   :  { %v270_v40 = vsub.f32 %v268_v39, %v269_v37  ;;  %v772_v37 = vld [vmem:[%s1209_s2 + $0x10] sm:$0xff] }
 0x3d5   :  { %v271_v41 = vmax.f32 %v270_v40, 0.0 }
 0x3d7   :  { %v274_v42 = vadd.f32 1e-05, %v271_v41 }
 0x3d9   :  { %848 = vrsqrt.f32 %v274_v42  ;;  %vm281_vm4 = vweird.f32 %v274_v42 }
 0x3df   :  { %v849_v43 = vpop.eup %848 }
 0x3e0   :  { %v276_v44 = vmul.f32 %v849_v43, %v274_v42  ;;  %vm282_vm10 = vweird.f32 %v849_v43 }
 0x3e1   :  { %vm283_vm5 = vmor %vm281_vm4, %vm282_vm10  ;;  %vm1235_vm10 = vcmask 474112   ;;  %vm1236_vm4 = vcmask 482304  }
 0x3e2   :  { %v277_v45 = vmul.f32 %v849_v43, %v276_v44 }
 0x3e4   :  { %v278_v46 = vmul.f32 0.5, %v277_v45 }
 0x3e6   :  { %v279_v47 = vsub.f32 1.5, %v278_v46 }
 0x3e8   :  { %v280_v49 = vmul.f32 %v849_v43, %v279_v47 }
 0x3ea   :  { %v284_v50 = vsel %vm283_vm5, %v849_v43, %v280_v49  ;;  %vm1237_vm5 = vcmask 982016   ;;  %v773_v43 = vld [vmem:[%s1210_s3 + $0x10] sm:$0xff] }
 0x3eb   :  { %v285_v51 = vmul.f32 %v747_v48, %v284_v50 }
 0x3ed   :  { %292 = vperm.xlu1 %842, %v285_v51   ;;  %v288_v52 = vmul.f32 %v285_v51, %v267_v35 }
 0x3ef   :  { %v289_v54 = vsub.f32 %v748_v53, %v288_v52 }
 0x3f5   :  { %298 = vperm.xlu1 %842, %v289_v54  }
 0x45f   :  { %v293_v55 = vpop.permute.xlu1 %292 }
 0x460   :  { %v295_v56 = vmul.f32 %v293_v55, %v256_v29 }
 0x467   :  { %v299_v57 = vpop.permute.xlu1 %298 }
 0x468   :  { %v301_v58 = vadd.f32 %v299_v57, %v295_v56 }
 0x46a   :  { %v302_v59 = vmax.f32 %v301_v58, 0.0 }
 0x46c   :  { %v303_v60 = vmul.f32 %v302_v59, %v995_v38 }
 0x46e   :  { %341 = vrot.lane.b32.xlu0 %v303_v60, %s884_s19  ;;  %345 = vrot.lane.b32.xlu2 %v303_v60, %s886_s21 }
 0x46f   :  { %357 = vrot.lane.b32.xlu1 %v303_v60, %s882_s17 }
 0x476   :  { %321 = vrot.lane.b32.xlu0 %v303_v60, %s891_s25  ;;  %325 = vrot.lane.b32.xlu2 %v303_v60, %s890_s24 }
 0x477   :  { %353 = vrot.lane.b32.xlu1 %v303_v60, %s885_s20 }
 0x47e   :  { %309 = vrot.lane.b32.xlu0 %v303_v60, %s894_s28  ;;  %313 = vrot.lane.b32.xlu2 %v303_v60, %s893_s27 }
 0x47f   :  { %349 = vrot.lane.b32.xlu1 %v303_v60, %s883_s18 }
 0x487   :  { %337 = vrot.lane.b32.xlu1 %v303_v60, %s887_s22 }
 0x48f   :  { %333 = vrot.lane.b32.xlu1 %v303_v60, %s888_s0 }
 0x497   :  { %329 = vrot.lane.b32.xlu1 %v303_v60, %s889_s23 }
 0x49f   :  { %317 = vrot.lane.b32.xlu1 %v303_v60, %s892_s26 }
 0x4a7   :  { %305 = vrot.lane.b32.xlu1 %v303_v60, %s895_s29 }
 0x4c8   :  { %v346_v0 = vpop.permute.xlu2 %345 }
 0x4d0   :  { %v326_v4 = vpop.permute.xlu2 %325 }
 0x4d8   :  { %v314_v8 = vpop.permute.xlu2 %313 }
 0x4e0   :  { %v342_v1 = vpop.permute.xlu0 %341 }
 0x4e1   :  { %v358_v61 = vpop.permute.xlu1 %357 }
 0x4e2   :  { %750 = vmatpush.msk.msra.mxu2 %vm106_vm0, %v358_v61 }
 0x4e8   :  { %v322_v6 = vpop.permute.xlu0 %321 }
 0x4e9   :  { %v354_v62 = vpop.permute.xlu1 %353 }
 0x4ea   :  { %751 = vmatpush.msk.msra.mxu2 %vm101_vm1, %v354_v62 }
 0x4f0   :  { %v310_v9 = vpop.permute.xlu0 %309 }
 0x4f1   :  { %v350_v63 = vpop.permute.xlu1 %349 }
 0x4f2   :  { %752 = vmatpush.msk.msra.mxu2 %vm96_vm2, %v350_v63 }
 0x4f4   :  { %753 = vmatpush.msk.msra.mxu2 %vm91_vm3, %v346_v0  ;;  %v774_v0 = vld [vmem:[%s1208_s1 + $0x18] sm:$0xff] }
 0x4f6   :  { %754 = vmatpush.msk.msra.mxu2 %vm1234_vm7, %v342_v1 }
 0x4f9   :  { %v338_v2 = vpop.permute.xlu1 %337 }
 0x4fa   :  { %755 = vmatpush.msk.msra.mxu2 %vm1235_vm10, %v338_v2 }
 0x501   :  { %v334_v3 = vpop.permute.xlu1 %333 }
 0x502   :  { %756 = vmatpush.msk.msra.mxu2 %vm1236_vm4, %v334_v3 }
 0x504   :  { %374 = vmatpush.msra.mxu2 %v303_v60 }
 0x509   :  { %v330_v5 = vpop.permute.xlu1 %329 }
 0x50a   :  { %758 = vmatpush.msk.msra.mxu2 %vm949_vm9, %v330_v5 }
 0x50c   :  { %760 = vmatpush.msk.msra.mxu2 %vm953_vm11, %v326_v4 }
 0x50e   :  { %762 = vmatpush.msk.msra.mxu2 %vm959_vm13, %v322_v6 }
 0x511   :  { %v318_v7 = vpop.permute.xlu1 %317 }
 0x512   :  { %764 = vmatpush.msk.msra.mxu2 %vm965_vm15, %v318_v7 }
 0x514   :  { %766 = vmatpush.msk.msra.mxu2 %vm971_vm8, %v314_v8 }
 0x516   :  { %768 = vmatpush.msk.msra.mxu2 %vm977_vm6, %v310_v9 }
 0x519   :  { %v306_v13 = vpop.permute.xlu1 %305 }
 0x51a   :  { %770 = vmatpush.msk.msra.mxu2 %vm983_vm12, %v306_v13 }
 0x51b   :  { %771 = vmatmul.msk.f32.vlgmr.msra.gmra.mxu2 %vm1237_vm5, %v749_v12  ;;  %vm1238_vm5 = vcmask 465920  }
 0x59e   :  { %v383_v16 = vpop.f32.mrf.mxu2 }
 0x59f   :  { %v386_v19 = vmul.f32 %v383_v16, %v995_v38 }
 0x5a1   :  { %v388_v20 = vsel %vm135_vm14, %v386_v19, 0.0  ;;  %v387_v22 = vmul.f32 %v386_v19, %v386_v19 }
 0x5a2   :  { %389 = vadd.xlane.f32.xlu2 %v388_v20 }
 0x5a3   :  { %v391_v23 = vsel %vm135_vm14, %v387_v22, 0.0 }
 0x5a4   :  { %392 = vadd.xlane.f32.xlu0 %v391_v23 }
 0x615   :  { %v390_v24 = vpop.xlane.xlu2 %389 }
 0x616   :  { %v394_v25 = vmul.f32 0.03125, %v390_v24 }
 0x617   :  { %v393_v26 = vpop.xlane.xlu0 %392 }
 0x618   :  { %v396_v27 = vmul.f32 %v394_v25, %v394_v25  ;;  %v395_v28 = vmul.f32 0.03125, %v393_v26 }
 0x61a   :  { %v397_v29 = vsub.f32 %v395_v28, %v396_v27  ;;  %v797_v27 = vld [vmem:[%s1209_s2 + $0x18] sm:$0xff] }
 0x61c   :  { %v398_v30 = vmax.f32 %v397_v29, 0.0 }
 0x61e   :  { %v401_v31 = vadd.f32 1e-05, %v398_v30 }
 0x620   :  { %850 = vrsqrt.f32 %v401_v31  ;;  %vm408_vm10 = vweird.f32 %v401_v31 }
 0x626   :  { %v851_v32 = vpop.eup %850 }
 0x627   :  { %v403_v33 = vmul.f32 %v851_v32, %v401_v31  ;;  %vm409_vm7 = vweird.f32 %v851_v32 }
 0x628   :  { %vm410_vm4 = vmor %vm408_vm10, %vm409_vm7  ;;  %vm1239_vm7 = vcmask 474112   ;;  %vm1240_vm10 = vcmask 482304  }
 0x629   :  { %v404_v34 = vmul.f32 %v851_v32, %v403_v33 }
 0x62b   :  { %v405_v35 = vmul.f32 0.5, %v404_v34 }
 0x62d   :  { %v406_v36 = vsub.f32 1.5, %v405_v35 }
 0x62f   :  { %v407_v39 = vmul.f32 %v851_v32, %v406_v36 }
 0x631   :  { %v411_v40 = vsel %vm410_vm4, %v851_v32, %v407_v39  ;;  %vm1241_vm4 = vcmask 982016   ;;  %v798_v32 = vld [vmem:[%s1210_s3 + $0x18] sm:$0xff] }
 0x632   :  { %v412_v41 = vmul.f32 %v772_v37, %v411_v40 }
 0x634   :  { %419 = vperm.xlu1 %842, %v412_v41   ;;  %v415_v42 = vmul.f32 %v412_v41, %v394_v25 }
 0x636   :  { %v416_v44 = vsub.f32 %v773_v43, %v415_v42 }
 0x63c   :  { %425 = vperm.xlu1 %842, %v416_v44  }
 0x6a6   :  { %v420_v45 = vpop.permute.xlu1 %419 }
 0x6a7   :  { %v422_v46 = vmul.f32 %v420_v45, %v383_v16 }
 0x6ae   :  { %v426_v47 = vpop.permute.xlu1 %425 }
 0x6af   :  { %v428_v48 = vadd.f32 %v426_v47, %v422_v46 }
 0x6b1   :  { %v429_v49 = vmax.f32 %v428_v48, 0.0 }
 0x6b3   :  { %v430_v50 = vmul.f32 %v429_v49, %v995_v38 }
 0x6b5   :  { %468 = vrot.lane.b32.xlu0 %v430_v50, %s884_s19  ;;  %472 = vrot.lane.b32.xlu2 %v430_v50, %s886_s21 }
 0x6b6   :  { %484 = vrot.lane.b32.xlu1 %v430_v50, %s882_s17 }
 0x6bd   :  { %452 = vrot.lane.b32.xlu0 %v430_v50, %s890_s24  ;;  %448 = vrot.lane.b32.xlu2 %v430_v50, %s891_s25 }
 0x6be   :  { %480 = vrot.lane.b32.xlu1 %v430_v50, %s885_s20 }
 0x6c5   :  { %440 = vrot.lane.b32.xlu0 %v430_v50, %s893_s27  ;;  %436 = vrot.lane.b32.xlu2 %v430_v50, %s894_s28 }
 0x6c6   :  { %476 = vrot.lane.b32.xlu1 %v430_v50, %s883_s18 }
 0x6ce   :  { %464 = vrot.lane.b32.xlu1 %v430_v50, %s887_s22 }
 0x6d6   :  { %460 = vrot.lane.b32.xlu1 %v430_v50, %s888_s0 }
 0x6de   :  { %456 = vrot.lane.b32.xlu1 %v430_v50, %s889_s23 }
 0x6e6   :  { %444 = vrot.lane.b32.xlu1 %v430_v50, %s892_s26 }
 0x6ee   :  { %432 = vrot.lane.b32.xlu1 %v430_v50, %s895_s29 }
 0x70f   :  { %v473_v54 = vpop.permute.xlu2 %472 }
 0x717   :  { %v449_v60 = vpop.permute.xlu2 %448 }
 0x71f   :  { %v437_v63 = vpop.permute.xlu2 %436 }
 0x727   :  { %v469_v55 = vpop.permute.xlu0 %468 }
 0x728   :  { %v485_v51 = vpop.permute.xlu1 %484 }
 0x729   :  { %775 = vmatpush.msk.msra.mxu3 %vm106_vm0, %v485_v51 }
 0x72f   :  { %v453_v58 = vpop.permute.xlu0 %452 }
 0x730   :  { %v481_v52 = vpop.permute.xlu1 %480 }
 0x731   :  { %776 = vmatpush.msk.msra.mxu3 %vm101_vm1, %v481_v52 }
 0x737   :  { %v441_v62 = vpop.permute.xlu0 %440 }
 0x738   :  { %v477_v53 = vpop.permute.xlu1 %476 }
 0x739   :  { %777 = vmatpush.msk.msra.mxu3 %vm96_vm2, %v477_v53 }
 0x73b   :  { %778 = vmatpush.msk.msra.mxu3 %vm91_vm3, %v473_v54 }
 0x73d   :  { %779 = vmatpush.msk.msra.mxu3 %vm1238_vm5, %v469_v55 }
 0x740   :  { %v465_v56 = vpop.permute.xlu1 %464 }
 0x741   :  { %780 = vmatpush.msk.msra.mxu3 %vm1239_vm7, %v465_v56 }
 0x748   :  { %v461_v57 = vpop.permute.xlu1 %460 }
 0x749   :  { %781 = vmatpush.msk.msra.mxu3 %vm1240_vm10, %v461_v57 }
 0x74b   :  { %501 = vmatpush.msra.mxu3 %v430_v50 }
 0x750   :  { %v457_v59 = vpop.permute.xlu1 %456 }
 0x751   :  { %783 = vmatpush.msk.msra.mxu3 %vm949_vm9, %v457_v59 }
 0x753   :  { %785 = vmatpush.msk.msra.mxu3 %vm953_vm11, %v453_v58 }
 0x755   :  { %787 = vmatpush.msk.msra.mxu3 %vm959_vm13, %v449_v60 }
 0x758   :  { %v445_v61 = vpop.permute.xlu1 %444 }
 0x759   :  { %789 = vmatpush.msk.msra.mxu3 %vm965_vm15, %v445_v61 }
 0x75b   :  { %791 = vmatpush.msk.msra.mxu3 %vm971_vm8, %v441_v62 }
 0x75d   :  { %793 = vmatpush.msk.msra.mxu3 %vm977_vm6, %v437_v63 }
 0x760   :  { %v433_v1 = vpop.permute.xlu1 %432 }
 0x761   :  { %795 = vmatpush.msk.msra.mxu3 %vm983_vm12, %v433_v1 }
 0x762   :  { %796 = vmatmul.msk.f32.vlgmr.msra.gmra.mxu3 %vm1241_vm4, %v774_v0  ;;  %vm1242_vm4 = vcmask 465920  }
 0x7e5   :  { %v510_v2 = vpop.f32.mrf.mxu3 }
 0x7e6   :  { %v513_v3 = vmul.f32 %v510_v2, %v995_v38 }
 0x7e8   :  { %v515_v4 = vsel %vm135_vm14, %v513_v3, 0.0  ;;  %v514_v5 = vmul.f32 %v513_v3, %v513_v3  ;;  %v822_v3 = vld [vmem:[%s1209_s2 + $0x20] sm:$0xff] }
 0x7e9   :  { %516 = vadd.xlane.f32.xlu0 %v515_v4 }
 0x7ea   :  { %v518_v6 = vsel %vm135_vm14, %v514_v5, 0.0 }
 0x7eb   :  { %519 = vadd.xlane.f32.xlu2 %v518_v6 }
 0x85c   :  { %v517_v7 = vpop.xlane.xlu0 %516 }
 0x85d   :  { %v521_v8 = vmul.f32 0.03125, %v517_v7 }
 0x85e   :  { %v520_v9 = vpop.xlane.xlu2 %519 }
 0x85f   :  { %v523_v12 = vmul.f32 %v521_v8, %v521_v8  ;;  %v522_v13 = vmul.f32 0.03125, %v520_v9 }
 0x861   :  { %v524_v16 = vsub.f32 %v522_v13, %v523_v12 }
 0x863   :  { %v525_v19 = vmax.f32 %v524_v16, 0.0 }
 0x865   :  { %v528_v20 = vadd.f32 1e-05, %v525_v19 }
 0x867   :  { %852 = vrsqrt.f32 %v528_v20  ;;  %vm535_vm7 = vweird.f32 %v528_v20 }
 0x86d   :  { %v853_v22 = vpop.eup %852 }
 0x86e   :  { %v530_v23 = vmul.f32 %v853_v22, %v528_v20  ;;  %vm536_vm5 = vweird.f32 %v853_v22 }
 0x86f   :  { %vm537_vm10 = vmor %vm535_vm7, %vm536_vm5  ;;  %vm1243_vm5 = vcmask 474112   ;;  %vm1244_vm7 = vcmask 482304  }
 0x870   :  { %v531_v24 = vmul.f32 %v853_v22, %v530_v23 }
 0x872   :  { %v532_v25 = vmul.f32 0.5, %v531_v24 }
 0x874   :  { %v533_v26 = vsub.f32 1.5, %v532_v25 }
 0x876   :  { %v534_v28 = vmul.f32 %v853_v22, %v533_v26 }
 0x878   :  { %v538_v29 = vsel %vm537_vm10, %v853_v22, %v534_v28 }
 0x879   :  { %v539_v30 = vmul.f32 %v797_v27, %v538_v29 }
 0x87b   :  { %546 = vperm.xlu1 %842, %v539_v30   ;;  %v542_v31 = vmul.f32 %v539_v30, %v521_v8  ;;  %v823_v8 = vld [vmem:[%s1210_s3 + $0x20] sm:$0xff] }
 0x87d   :  { %v543_v33 = vsub.f32 %v798_v32, %v542_v31 }
 0x883   :  { %552 = vperm.xlu1 %842, %v543_v33  }
 0x8ed   :  { %v547_v34 = vpop.permute.xlu1 %546 }
 0x8ee   :  { %v549_v35 = vmul.f32 %v547_v34, %v510_v2 }
 0x8f5   :  { %v553_v36 = vpop.permute.xlu1 %552 }
 0x8f6   :  { %v555_v37 = vadd.f32 %v553_v36, %v549_v35 }
 0x8f8   :  { %v556_v39 = vmax.f32 %v555_v37, 0.0 }
 0x8fa   :  { %v557_v40 = vmul.f32 %v556_v39, %v995_v38 }
 0x8fc   :  { %595 = vrot.lane.b32.xlu2 %v557_v40, %s884_s19  ;;  %599 = vrot.lane.b32.xlu0 %v557_v40, %s886_s21 }
 0x8fd   :  { %611 = vrot.lane.b32.xlu1 %v557_v40, %s882_s17 }
 0x904   :  { %575 = vrot.lane.b32.xlu2 %v557_v40, %s891_s25  ;;  %583 = vrot.lane.b32.xlu0 %v557_v40, %s889_s23 }
 0x905   :  { %607 = vrot.lane.b32.xlu1 %v557_v40, %s885_s20 }
 0x90c   :  { %563 = vrot.lane.b32.xlu2 %v557_v40, %s894_s28  ;;  %571 = vrot.lane.b32.xlu0 %v557_v40, %s892_s26 }
 0x90d   :  { %603 = vrot.lane.b32.xlu1 %v557_v40, %s883_s18 }
 0x914   :  { %559 = vrot.lane.b32.xlu0 %v557_v40, %s895_s29 }
 0x915   :  { %591 = vrot.lane.b32.xlu1 %v557_v40, %s887_s22  ;;  %s899_s22 = smov [#allocation2]  }
 0x91d   :  { %587 = vrot.lane.b32.xlu1 %v557_v40, %s888_s0  ;;  %s691_s0 = sshll.u32 %s899_s22, 4  ;;  %s692_s0 = int_to_ptr.vmem [resolvable:$true] %s691_s0 }
 0x925   :  { %579 = vrot.lane.b32.xlu1 %v557_v40, %s890_s24  ;;  %s693_s24 = sshll.u32 %s1211_s4, 4  ;;  %s694_s24 = int_to_ptr.hbm [resolvable:$true] %s693_s24 }
 0x92d   :  { %567 = vrot.lane.b32.xlu1 %v557_v40, %s893_s27 }
 0x956   :  { %v596_v45 = vpop.permute.xlu2 %595 }
 0x95e   :  { %v576_v49 = vpop.permute.xlu2 %575 }
 0x966   :  { %v564_v53 = vpop.permute.xlu2 %563 }
 0x96e   :  { %v600_v44 = vpop.permute.xlu0 %599 }
 0x96f   :  { %v612_v41 = vpop.permute.xlu1 %611 }
 0x970   :  { %800 = vmatpush.msk.msrb.mxu0 %vm106_vm0, %v612_v41  ;;  %vm1245_vm0 = vcmask 982016  }
 0x976   :  { %v584_v47 = vpop.permute.xlu0 %583 }
 0x977   :  { %v608_v42 = vpop.permute.xlu1 %607 }
 0x978   :  { %801 = vmatpush.msk.msrb.mxu0 %vm101_vm1, %v608_v42 }
 0x97e   :  { %v572_v51 = vpop.permute.xlu0 %571 }
 0x97f   :  { %v604_v43 = vpop.permute.xlu1 %603 }
 0x980   :  { %802 = vmatpush.msk.msrb.mxu0 %vm96_vm2, %v604_v43 }
 0x982   :  { %803 = vmatpush.msk.msrb.mxu0 %vm91_vm3, %v600_v44 }
 0x984   :  { %804 = vmatpush.msk.msrb.mxu0 %vm1242_vm4, %v596_v45 }
 0x986   :  { %v560_v11 = vpop.permute.xlu0 %559 }
 0x987   :  { %v592_v46 = vpop.permute.xlu1 %591 }
 0x988   :  { %805 = vmatpush.msk.msrb.mxu0 %vm1243_vm5, %v592_v46 }
 0x98f   :  { %v588_v48 = vpop.permute.xlu1 %587 }
 0x990   :  { %806 = vmatpush.msk.msrb.mxu0 %vm1244_vm7, %v588_v48 }
 0x992   :  { %628 = vmatpush.msrb.mxu0 %v557_v40 }
 0x994   :  { %808 = vmatpush.msk.msrb.mxu0 %vm949_vm9, %v584_v47 }
 0x997   :  { %v580_v50 = vpop.permute.xlu1 %579 }
 0x998   :  { %810 = vmatpush.msk.msrb.mxu0 %vm953_vm11, %v580_v50 }
 0x99a   :  { %812 = vmatpush.msk.msrb.mxu0 %vm959_vm13, %v576_v49 }
 0x99c   :  { %814 = vmatpush.msk.msrb.mxu0 %vm965_vm15, %v572_v51 }
 0x99f   :  { %v568_v52 = vpop.permute.xlu1 %567 }
 0x9a0   :  { %816 = vmatpush.msk.msrb.mxu0 %vm971_vm8, %v568_v52 }
 0x9a2   :  { %818 = vmatpush.msk.msrb.mxu0 %vm977_vm6, %v564_v53 }
 0x9a4   :  { %820 = vmatpush.msk.msrb.mxu0 %vm983_vm12, %v560_v11 }
 0x9a5   :  { %821 = vmatmul.msk.f32.vlgmr.msrb.gmra.mxu0 %vm1245_vm0, %v799_v10 }
 0xa22   :  { %v637_v14 = vpop.f32.mrf.mxu0 }
 0xa23   :  { %v640_v15 = vmul.f32 %v637_v14, %v995_v38 }
 0xa25   :  { %v642_v17 = vsel %vm135_vm14, %v640_v15, 0.0  ;;  %v641_v54 = vmul.f32 %v640_v15, %v640_v15 }
 0xa26   :  { %643 = vadd.xlane.f32.xlu1 %v642_v17 }
 0xa27   :  { %v645_v18 = vsel %vm135_vm14, %v641_v54, 0.0 }
 0xa28   :  { %646 = vadd.xlane.f32.xlu2 %v645_v18 }
 0xa99   :  { %v644_v55 = vpop.xlane.xlu1 %643 }
 0xa9a   :  { %v648_v56 = vmul.f32 0.03125, %v644_v55 }
 0xa9b   :  { %v647_v57 = vpop.xlane.xlu2 %646 }
 0xa9c   :  { %v650_v58 = vmul.f32 %v648_v56, %v648_v56  ;;  %v649_v59 = vmul.f32 0.03125, %v647_v57 }
 0xa9e   :  { %v651_v60 = vsub.f32 %v649_v59, %v650_v58 }
 0xaa0   :  { %v652_v21 = vmax.f32 %v651_v60, 0.0 }
 0xaa2   :  { %v655_v61 = vadd.f32 1e-05, %v652_v21 }
 0xaa4   :  { %854 = vrsqrt.f32 %v655_v61  ;;  %vm662_vm2 = vweird.f32 %v655_v61 }
 0xaaa   :  { %v855_v62 = vpop.eup %854 }
 0xaab   :  { %v657_v63 = vmul.f32 %v855_v62, %v655_v61  ;;  %vm663_vm1 = vweird.f32 %v855_v62 }
 0xaac   :  { %vm664_vm3 = vmor %vm662_vm2, %vm663_vm1 }
 0xaad   :  { %v658_v0 = vmul.f32 %v855_v62, %v657_v63 }
 0xaaf   :  { %v659_v1 = vmul.f32 0.5, %v658_v0 }
 0xab1   :  { %v660_v2 = vsub.f32 1.5, %v659_v1 }
 0xab3   :  { %v661_v4 = vmul.f32 %v855_v62, %v660_v2 }
 0xab5   :  { %v665_v5 = vsel %vm664_vm3, %v855_v62, %v661_v4 }
 0xab6   :  { %v666_v6 = vmul.f32 %v822_v3, %v665_v5 }
 0xab8   :  { %673 = vperm.xlu0 %843, %v666_v6   ;;  %v669_v7 = vmul.f32 %v666_v6, %v648_v56 }
 0xaba   :  { %v670_v9 = vsub.f32 %v823_v8, %v669_v7 }
 0xac0   :  { %679 = vperm.xlu0 %843, %v670_v9  }
 0xb2a   :  { %v674_v12 = vpop.permute.xlu0 %673 }
 0xb2b   :  { %v676_v13 = vmul.f32 %v674_v12, %v637_v14 }
 0xb32   :  { %v680_v16 = vpop.permute.xlu0 %679 }
 0xb33   :  { %v682_v19 = vadd.f32 %v680_v16, %v676_v13 }
 0xb35   :  { %v683_v20 = vmax.f32 %v682_v19, 0.0 }
 0xb37   :  { %v684_v22 = vmul.f32 %v683_v20, %v995_v38 }
 0xb39   :  { %685 = vst.msk [vmem:[#allocation2] sm:$0xff] %vm135_vm14, %v684_v22 }
 0xb3a   :  { %696 = dma.vmem_to_hbm [thread:$0]  %s692_s0, 128, %s694_s24, [#allocation3]  }
 0xb3b   :  { %880 = dma.done.wait [#allocation3], 128  }
 0xb3c   :  { %881 = vsyncadd [#allocation3], 4294967168 }
 0xb3d   :  { %701 = vsyncpa [#allocation3], 1 }

</bundles_post_ra>
